<compile_context>
chip_gen: v5e
topology: v5e:2x2
jax: 0.10.0
libtpu: 0.0.40
codegen_flags: <defaults>
</compile_context>

<pallas_src>
import functools

import jax
import jax.numpy as jnp
import numpy as np
from jax.experimental import pallas as pl
from jax.experimental.pallas import tpu as pltpu


# ----------------------------- Pallas kernel ------------------------------- #

def _lstm_step0(gates, h):
    """Single LSTM step with zero initial (h, c). gates: (B, 3h), packed [i,g,o]."""
    i = jax.nn.sigmoid(gates[:, 0 * h:1 * h])
    g = jnp.tanh(gates[:, 1 * h:2 * h])
    o = jax.nn.sigmoid(gates[:, 2 * h:3 * h])
    c = i * g
    return o * jnp.tanh(c)


def lstm_fc_ae_kernel(x_ref,
                      w_enc_ref, b_enc_ref,
                      w_efc_ref, b_efc_ref,
                      w_dfc_ref, b_dfc_ref,
                      w_dec_ref, b_dec_ref,
                      out_ref, *, hidden, in_dim):
    mm_dtype = w_enc_ref.dtype          # bf16 (default) or f32; MXU accumulates f32

    x = x_ref[...].astype(mm_dtype)                                    # (TB, D)

    # encoder LSTM (seq len 1, zero init state), gates packed [i, g, o]
    gates_e = jnp.dot(x, w_enc_ref[...],
                      preferred_element_type=jnp.float32) + b_enc_ref[...]
    h_enc = _lstm_step0(gates_e, hidden)                               # (TB, H) f32

    # encoder_fc + ReLU
    e = jnp.dot(h_enc.astype(mm_dtype), w_efc_ref[...],
                preferred_element_type=jnp.float32) + b_efc_ref[...]
    e = jnp.maximum(e, 0.0)                                            # (TB, H) f32

    # decoder_fc + ReLU
    d = jnp.dot(e.astype(mm_dtype), w_dfc_ref[...],
                preferred_element_type=jnp.float32) + b_dfc_ref[...]
    d = jnp.maximum(d, 0.0)                                            # (TB, H) f32

    # decoder LSTM (seq len 1, zero init state)
    gates_d = jnp.dot(d.astype(mm_dtype), w_dec_ref[...],
                      preferred_element_type=jnp.float32) + b_dec_ref[...]
    out_ref[...] = _lstm_step0(gates_d, in_dim).astype(out_ref.dtype)  # (TB, D)


# ------------------------------ wrapper ------------------------------------ #

def lstm_fc_autoencoder(x, params, *, hidden, in_dim, block_b=None, use_bf16=True):
    """x: (B, in_dim) float32.  params: 8 arrays from init_params (f32)."""
    B = x.shape[0]
    assert in_dim % 128 == 0 and hidden % 128 == 0, "use lane-aligned D/H"
    # TODO(synk): the PyTorch defaults (D=300, H=100) are not lane-aligned; they
    #             would need zero-padding of D/H to multiples of 128 up front.

    if block_b is None:
        if B <= 512:
            block_b = B                      # single block: no grid / pipeline overhead
        else:
            for cand in (256, 128):          # fill the 256/128-row MXU pass
                if B % cand == 0:
                    block_b = cand
                    break
            else:
                block_b = B
    assert B % block_b == 0, "batch must be a multiple of block_b"
    if block_b != B:
        assert block_b % 8 == 0, "tiled batch block must be sublane-aligned"

    # Cast weight matrices (even indices) to bf16 for the MXU; keep biases f32
    # since the bias add / LSTM nonlinearities stay in f32.
    if use_bf16:
        params = tuple(p.astype(jnp.bfloat16) if k % 2 == 0 else p
                       for k, p in enumerate(params))

    kernel = functools.partial(lstm_fc_ae_kernel, hidden=hidden, in_dim=in_dim)

    # x / out: tiled along batch.  Weights & biases: one block, DMA'd once and
    # held resident in VMEM across all grid steps (constant index_map).
    x_spec = pl.BlockSpec((block_b, in_dim), lambda i: (i, 0))
    const_specs = [pl.BlockSpec(p.shape, lambda i: (0, 0)) for p in params]
    out_spec = pl.BlockSpec((block_b, in_dim), lambda i: (i, 0))

    flops = 2 * B * (in_dim * 3 * hidden + 2 * hidden * hidden + hidden * 3 * in_dim)
    transcendentals = 4 * B * (hidden + in_dim)          # 2x sigmoid + 2x tanh / LSTM
    param_bytes = sum(p.size * p.dtype.itemsize for p in params)
    bytes_accessed = (x.size + B * in_dim) * x.dtype.itemsize + param_bytes

    # Rough per-step VMEM working set: double-buffered x/out tiles + resident
    # weights + f32 intermediates.  Only raise the scoped limit (16 MiB default
    # on v5e) when a very large batch tile actually needs it; cap at v7x's
    # 64 MiB physical VMEM.
    act_bytes = 2 * 2 * block_b * in_dim * x.dtype.itemsize
    scratch_bytes = block_b * (3 * hidden + 2 * hidden + 3 * in_dim) * 4
    vmem_need = act_bytes + param_bytes + scratch_bytes
    vmem_limit = (int(min(2 * vmem_need, 64 * 1024 * 1024))
                  if vmem_need > 12 * 1024 * 1024 else None)

    return pl.pallas_call(
        kernel,
        out_shape=jax.ShapeDtypeStruct((B, in_dim), x.dtype),
        grid=(B // block_b,),
        in_specs=[x_spec] + const_specs,
        out_specs=out_spec,
        compiler_params=pltpu.CompilerParams(
            dimension_semantics=("parallel",),
            vmem_limit_bytes=vmem_limit),
        cost_estimate=pl.CostEstimate(flops=flops,
                                      transcendentals=transcendentals,
                                      bytes_accessed=bytes_accessed),
    )(x, *params)


# --------------------------- parameter init -------------------------------- #

def init_params(key, in_dim, hidden):
    """PyTorch-style uniform(-1/sqrt(fan), 1/sqrt(fan)) init.

    LSTM weights are generated with the full (i, f, g, o) gate layout, then the
    dead forget-gate block is dropped and the remaining [i, g, o] blocks are
    pre-transposed to (in, out).  LSTM biases are combined (b_ih + b_hh) and
    reshaped to (1, 3*out) for in-kernel broadcasting.  All params are f32;
    the wrapper casts the weight matrices to bf16 for the MXU.
    """
    ks = jax.random.split(key, 10)
    k_enc = 1.0 / np.sqrt(hidden)
    k_dec = 1.0 / np.sqrt(in_dim)

    def u(k, shape, scale):
        return jax.random.uniform(k, shape, jnp.float32, -scale, scale)

    def drop_forget(w4, h):
        # rows packed [i, f, g, o] -> keep [i, g, o]
        return jnp.concatenate([w4[0 * h:1 * h], w4[2 * h:3 * h], w4[3 * h:4 * h]],
                               axis=0)

    # encoder LSTM: W_ih (4H, D), b_ih (4H,), b_hh (4H,)
    w_ih_e = u(ks[0], (4 * hidden, in_dim), k_enc)
    b_e = u(ks[1], (4 * hidden,), k_enc) + u(ks[2], (4 * hidden,), k_enc)

    # encoder fc: (H, H)
    w_efc = u(ks[3], (hidden, hidden), k_enc)
    b_efc = u(ks[4], (hidden,), k_enc)

    # decoder fc: (H, H)
    w_dfc = u(ks[5], (hidden, hidden), k_enc)
    b_dfc = u(ks[6], (hidden,), k_enc)

    # decoder LSTM: W_ih (4D, H), b_ih (4D,), b_hh (4D,)
    w_ih_d = u(ks[7], (4 * in_dim, hidden), k_dec)
    b_d = u(ks[8], (4 * in_dim,), k_dec) + u(ks[9], (4 * in_dim,), k_dec)

    params = (
        drop_forget(w_ih_e, hidden).T,                            # (D, 3H)
        drop_forget(b_e[:, None], hidden).reshape(1, 3 * hidden),  # (1, 3H)
        w_efc.T,                                                  # (H, H)
        b_efc.reshape(1, hidden),                                 # (1, H)
        w_dfc.T,                                                  # (H, H)
        b_dfc.reshape(1, hidden),                                 # (1, H)
        drop_forget(w_ih_d, in_dim).T,                            # (H, 3D)
        drop_forget(b_d[:, None], in_dim).reshape(1, 3 * in_dim),  # (1, 3D)
    )
    return params


# ------------------------- pure-JAX reference ------------------------------ #

def reference(x, params, hidden, in_dim):
    """Full-f32 reference of the collapsed forward pass."""
    w_e, b_e, w_efc, b_efc, w_dfc, b_dfc, w_d, b_d = params

    def lstm0(gates, h):
        i = jax.nn.sigmoid(gates[:, 0 * h:1 * h])
        g = jnp.tanh(gates[:, 1 * h:2 * h])
        o = jax.nn.sigmoid(gates[:, 2 * h:3 * h])
        return o * jnp.tanh(i * g)

    h_enc = lstm0(x @ w_e + b_e, hidden)
    e = jnp.maximum(h_enc @ w_efc + b_efc, 0.0)
    d = jnp.maximum(e @ w_dfc + b_dfc, 0.0)
    return lstm0(d @ w_d + b_d, in_dim)


# --------------------------------- main ------------------------------------ #

if __name__ == "__main__":
    # Small lane-aligned analogue of the PyTorch (B=20, D=300, H=100) shapes.
    # B=16 <= 512 -> whole batch runs as a single block (no grid overhead).
    B, IN_DIM, HIDDEN = 16, 256, 128

    key = jax.random.PRNGKey(0)
    k_x, k_p = jax.random.split(key)
    x = jax.random.normal(k_x, (B, IN_DIM), jnp.float32)
    params = init_params(k_p, IN_DIM, HIDDEN)

    out = lstm_fc_autoencoder(x, params, hidden=HIDDEN, in_dim=IN_DIM)
    out = jax.block_until_ready(out)

    # Kernel uses bf16 matmul operands with f32 accumulation; compare against
    # the full-f32 reference with a correspondingly loosened tolerance.
    ref = reference(x, params, HIDDEN, IN_DIM)
    np.testing.assert_allclose(np.asarray(out), np.asarray(ref),
                               rtol=2e-2, atol=2e-2)
    assert out.shape == (B, IN_DIM)

    print("KERNEL_OK")
</pallas_src>

<mosaic_0001>
module attributes {stable_mosaic.version = 11 : i64} {
  func.func @lstm_fc_ae_kernel(%arg0: i32, %arg1: memref<16x256xf32, #tpu.memory_space<vmem>>, %arg2: memref<256x384xbf16, #tpu.memory_space<vmem>>, %arg3: memref<1x384xf32, #tpu.memory_space<vmem>>, %arg4: memref<128x128xbf16, #tpu.memory_space<vmem>>, %arg5: memref<1x128xf32, #tpu.memory_space<vmem>>, %arg6: memref<128x128xbf16, #tpu.memory_space<vmem>>, %arg7: memref<1x128xf32, #tpu.memory_space<vmem>>, %arg8: memref<128x768xbf16, #tpu.memory_space<vmem>>, %arg9: memref<1x768xf32, #tpu.memory_space<vmem>>, %arg10: memref<16x256xf32, #tpu.memory_space<vmem>>) attributes {dimension_semantics = [#tpu.dimension_semantics<parallel>], iteration_bounds = array<i64: 1>, scalar_prefetch = 0 : i64, scratch_operands = 0 : i64, tpu.core_type = #tpu.core_type<tc>, window_params = [{transform_indices = @transform_0, window_bounds = array<i64: 16, 256>}, {pipeline_mode = #tpu.pipeline_mode<synchronous>, transform_indices = @transform_1, window_bounds = array<i64: 256, 384>}, {pipeline_mode = #tpu.pipeline_mode<synchronous>, transform_indices = @transform_2, window_bounds = array<i64: 1, 384>}, {pipeline_mode = #tpu.pipeline_mode<synchronous>, transform_indices = @transform_3, window_bounds = array<i64: 128, 128>}, {pipeline_mode = #tpu.pipeline_mode<synchronous>, transform_indices = @transform_4, window_bounds = array<i64: 1, 128>}, {pipeline_mode = #tpu.pipeline_mode<synchronous>, transform_indices = @transform_5, window_bounds = array<i64: 128, 128>}, {pipeline_mode = #tpu.pipeline_mode<synchronous>, transform_indices = @transform_6, window_bounds = array<i64: 1, 128>}, {pipeline_mode = #tpu.pipeline_mode<synchronous>, transform_indices = @transform_7, window_bounds = array<i64: 128, 768>}, {pipeline_mode = #tpu.pipeline_mode<synchronous>, transform_indices = @transform_8, window_bounds = array<i64: 1, 768>}, {transform_indices = @transform_9, window_bounds = array<i64: 16, 256>}]} {
    %c0 = arith.constant 0 : index
    %c0_0 = arith.constant 0 : index
    %0 = vector.load %arg1[%c0, %c0_0] : memref<16x256xf32, #tpu.memory_space<vmem>>, vector<16x256xf32>
    %1 = arith.truncf %0 : vector<16x256xf32> to vector<16x256xbf16>
    %c0_1 = arith.constant 0 : index
    %c0_2 = arith.constant 0 : index
    %2 = vector.load %arg2[%c0_1, %c0_2] : memref<256x384xbf16, #tpu.memory_space<vmem>>, vector<256x384xbf16>
    %cst = arith.constant dense<0.000000e+00> : vector<16x384xf32>
    %3 = tpu.matmul %1, %2, %cst {dimension_numbers = #tpu.dot_dimension_numbers<[1], [0], [0], [1], [0, 0, 1, 1], [], []>} : vector<16x256xbf16>, vector<256x384xbf16>, vector<16x384xf32> -> vector<16x384xf32>
    %c0_3 = arith.constant 0 : index
    %c0_4 = arith.constant 0 : index
    %4 = vector.load %arg3[%c0_3, %c0_4] : memref<1x384xf32, #tpu.memory_space<vmem>>, vector<1x384xf32>
    %5 = vector.broadcast %4 : vector<1x384xf32> to vector<16x384xf32>
    %6 = arith.addf %3, %5 : vector<16x384xf32>
    %7 = vector.extract_strided_slice %6 {offsets = [0, 0], sizes = [16, 128], strides = [1, 1]} : vector<16x384xf32> to vector<16x128xf32>
    %8 = arith.negf %7 : vector<16x128xf32>
    %9 = math.exp %8 : vector<16x128xf32>
    %cst_5 = arith.constant 1.000000e+00 : f32
    %10 = vector.broadcast %cst_5 : f32 to vector<16x128xf32>
    %11 = arith.addf %10, %9 : vector<16x128xf32>
    %12 = arith.divf %10, %11 : vector<16x128xf32>
    %13 = vector.extract_strided_slice %6 {offsets = [0, 128], sizes = [16, 128], strides = [1, 1]} : vector<16x384xf32> to vector<16x128xf32>
    %14 = math.tanh %13 : vector<16x128xf32>
    %15 = vector.extract_strided_slice %6 {offsets = [0, 256], sizes = [16, 128], strides = [1, 1]} : vector<16x384xf32> to vector<16x128xf32>
    %16 = arith.negf %15 : vector<16x128xf32>
    %17 = math.exp %16 : vector<16x128xf32>
    %cst_6 = arith.constant 1.000000e+00 : f32
    %18 = vector.broadcast %cst_6 : f32 to vector<16x128xf32>
    %19 = arith.addf %18, %17 : vector<16x128xf32>
    %20 = arith.divf %18, %19 : vector<16x128xf32>
    %21 = arith.mulf %12, %14 : vector<16x128xf32>
    %22 = math.tanh %21 : vector<16x128xf32>
    %23 = arith.mulf %20, %22 : vector<16x128xf32>
    %24 = arith.truncf %23 : vector<16x128xf32> to vector<16x128xbf16>
    %c0_7 = arith.constant 0 : index
    %c0_8 = arith.constant 0 : index
    %25 = vector.load %arg4[%c0_7, %c0_8] : memref<128x128xbf16, #tpu.memory_space<vmem>>, vector<128x128xbf16>
    %cst_9 = arith.constant dense<0.000000e+00> : vector<16x128xf32>
    %26 = tpu.matmul %24, %25, %cst_9 {dimension_numbers = #tpu.dot_dimension_numbers<[1], [0], [0], [1], [0, 0, 1, 1], [], []>} : vector<16x128xbf16>, vector<128x128xbf16>, vector<16x128xf32> -> vector<16x128xf32>
    %c0_10 = arith.constant 0 : index
    %c0_11 = arith.constant 0 : index
    %27 = vector.load %arg5[%c0_10, %c0_11] : memref<1x128xf32, #tpu.memory_space<vmem>>, vector<1x128xf32>
    %28 = vector.broadcast %27 : vector<1x128xf32> to vector<16x128xf32>
    %29 = arith.addf %26, %28 : vector<16x128xf32>
    %cst_12 = arith.constant 0.000000e+00 : f32
    %30 = vector.broadcast %cst_12 : f32 to vector<16x128xf32>
    %31 = arith.maximumf %29, %30 : vector<16x128xf32>
    %32 = arith.truncf %31 : vector<16x128xf32> to vector<16x128xbf16>
    %c0_13 = arith.constant 0 : index
    %c0_14 = arith.constant 0 : index
    %33 = vector.load %arg6[%c0_13, %c0_14] : memref<128x128xbf16, #tpu.memory_space<vmem>>, vector<128x128xbf16>
    %cst_15 = arith.constant dense<0.000000e+00> : vector<16x128xf32>
    %34 = tpu.matmul %32, %33, %cst_15 {dimension_numbers = #tpu.dot_dimension_numbers<[1], [0], [0], [1], [0, 0, 1, 1], [], []>} : vector<16x128xbf16>, vector<128x128xbf16>, vector<16x128xf32> -> vector<16x128xf32>
    %c0_16 = arith.constant 0 : index
    %c0_17 = arith.constant 0 : index
    %35 = vector.load %arg7[%c0_16, %c0_17] : memref<1x128xf32, #tpu.memory_space<vmem>>, vector<1x128xf32>
    %36 = vector.broadcast %35 : vector<1x128xf32> to vector<16x128xf32>
    %37 = arith.addf %34, %36 : vector<16x128xf32>
    %cst_18 = arith.constant 0.000000e+00 : f32
    %38 = vector.broadcast %cst_18 : f32 to vector<16x128xf32>
    %39 = arith.maximumf %37, %38 : vector<16x128xf32>
    %40 = arith.truncf %39 : vector<16x128xf32> to vector<16x128xbf16>
    %c0_19 = arith.constant 0 : index
    %c0_20 = arith.constant 0 : index
    %41 = vector.load %arg8[%c0_19, %c0_20] : memref<128x768xbf16, #tpu.memory_space<vmem>>, vector<128x768xbf16>
    %cst_21 = arith.constant dense<0.000000e+00> : vector<16x768xf32>
    %42 = tpu.matmul %40, %41, %cst_21 {dimension_numbers = #tpu.dot_dimension_numbers<[1], [0], [0], [1], [0, 0, 1, 1], [], []>} : vector<16x128xbf16>, vector<128x768xbf16>, vector<16x768xf32> -> vector<16x768xf32>
    %c0_22 = arith.constant 0 : index
    %c0_23 = arith.constant 0 : index
    %43 = vector.load %arg9[%c0_22, %c0_23] : memref<1x768xf32, #tpu.memory_space<vmem>>, vector<1x768xf32>
    %44 = vector.broadcast %43 : vector<1x768xf32> to vector<16x768xf32>
    %45 = arith.addf %42, %44 : vector<16x768xf32>
    %46 = vector.extract_strided_slice %45 {offsets = [0, 0], sizes = [16, 256], strides = [1, 1]} : vector<16x768xf32> to vector<16x256xf32>
    %47 = arith.negf %46 : vector<16x256xf32>
    %48 = math.exp %47 : vector<16x256xf32>
    %cst_24 = arith.constant 1.000000e+00 : f32
    %49 = vector.broadcast %cst_24 : f32 to vector<16x256xf32>
    %50 = arith.addf %49, %48 : vector<16x256xf32>
    %51 = arith.divf %49, %50 : vector<16x256xf32>
    %52 = vector.extract_strided_slice %45 {offsets = [0, 256], sizes = [16, 256], strides = [1, 1]} : vector<16x768xf32> to vector<16x256xf32>
    %53 = math.tanh %52 : vector<16x256xf32>
    %54 = vector.extract_strided_slice %45 {offsets = [0, 512], sizes = [16, 256], strides = [1, 1]} : vector<16x768xf32> to vector<16x256xf32>
    %55 = arith.negf %54 : vector<16x256xf32>
    %56 = math.exp %55 : vector<16x256xf32>
    %cst_25 = arith.constant 1.000000e+00 : f32
    %57 = vector.broadcast %cst_25 : f32 to vector<16x256xf32>
    %58 = arith.addf %57, %56 : vector<16x256xf32>
    %59 = arith.divf %57, %58 : vector<16x256xf32>
    %60 = arith.mulf %51, %53 : vector<16x256xf32>
    %61 = math.tanh %60 : vector<16x256xf32>
    %62 = arith.mulf %59, %61 : vector<16x256xf32>
    %c0_26 = arith.constant 0 : index
    %c0_27 = arith.constant 0 : index
    %63 = vector.load %arg10[%c0_26, %c0_27] : memref<16x256xf32, #tpu.memory_space<vmem>>, vector<16x256xf32>
    tpu.vector_store %arg10[%c0_26, %c0_27], %62 {strides = array<i32>} : memref<16x256xf32, #tpu.memory_space<vmem>>, vector<16x256xf32>,
    return
  }
  func.func @transform_0(%arg0: i32) -> (i32, i32) {
    %c0_i32 = arith.constant 0 : i32
    %c0_i32_0 = arith.constant 0 : i32
    return %arg0, %c0_i32 : i32, i32
  }
  func.func @transform_1(%arg0: i32) -> (i32, i32) {
    %c0_i32 = arith.constant 0 : i32
    %c0_i32_0 = arith.constant 0 : i32
    %c0_i32_1 = arith.constant 0 : i32
    return %c0_i32, %c0_i32_0 : i32, i32
  }
  func.func @transform_2(%arg0: i32) -> (i32, i32) {
    %c0_i32 = arith.constant 0 : i32
    %c0_i32_0 = arith.constant 0 : i32
    %c0_i32_1 = arith.constant 0 : i32
    return %c0_i32, %c0_i32_0 : i32, i32
  }
  func.func @transform_3(%arg0: i32) -> (i32, i32) {
    %c0_i32 = arith.constant 0 : i32
    %c0_i32_0 = arith.constant 0 : i32
    %c0_i32_1 = arith.constant 0 : i32
    return %c0_i32, %c0_i32_0 : i32, i32
  }
  func.func @transform_4(%arg0: i32) -> (i32, i32) {
    %c0_i32 = arith.constant 0 : i32
    %c0_i32_0 = arith.constant 0 : i32
    %c0_i32_1 = arith.constant 0 : i32
    return %c0_i32, %c0_i32_0 : i32, i32
  }
  func.func @transform_5(%arg0: i32) -> (i32, i32) {
    %c0_i32 = arith.constant 0 : i32
    %c0_i32_0 = arith.constant 0 : i32
    %c0_i32_1 = arith.constant 0 : i32
    return %c0_i32, %c0_i32_0 : i32, i32
  }
  func.func @transform_6(%arg0: i32) -> (i32, i32) {
    %c0_i32 = arith.constant 0 : i32
    %c0_i32_0 = arith.constant 0 : i32
    %c0_i32_1 = arith.constant 0 : i32
    return %c0_i32, %c0_i32_0 : i32, i32
  }
  func.func @transform_7(%arg0: i32) -> (i32, i32) {
    %c0_i32 = arith.constant 0 : i32
    %c0_i32_0 = arith.constant 0 : i32
    %c0_i32_1 = arith.constant 0 : i32
    return %c0_i32, %c0_i32_0 : i32, i32
  }
  func.func @transform_8(%arg0: i32) -> (i32, i32) {
    %c0_i32 = arith.constant 0 : i32
    %c0_i32_0 = arith.constant 0 : i32
    %c0_i32_1 = arith.constant 0 : i32
    return %c0_i32, %c0_i32_0 : i32, i32
  }
  func.func @transform_9(%arg0: i32) -> (i32, i32) {
    %c0_i32 = arith.constant 0 : i32
    %c0_i32_0 = arith.constant 0 : i32
    return %arg0, %c0_i32 : i32, i32
  }
}

</mosaic_0001>

<bundles_post_ra>
// kernel: tpu_custom_call.1
= control target key start
LH: loop header
LB: loop body
LE: loop exit
PB: predicated region body
PF: predicated region fallthrough
CT: control target
= control target key end

     0   :  { %14 = vsyncpa [#allocation3], 0  ;;  %s2527_s0 = inlined_call_operand.hbm [shape: f32[16,256], index: 0, kind: input, shape index: {}]   ;;  %s2528_s1 = inlined_call_operand.hbm [shape: bf16[256,384], index: 1, kind: input, shape index: {}]   ;;  %s2529_s2 = inlined_call_operand.hbm [shape: f32[1,384], index: 2, kind: input, shape index: {}]   ;;  %s2530_s3 = inlined_call_operand.hbm [shape: bf16[128,128], index: 3, kind: input, shape index: {}]   ;;  %s2531_s4 = inlined_call_operand.vmem [shape: f32[1,128], index: 4, kind: input, shape index: {}]   ;;  %s2532_s5 = inlined_call_operand.hbm [shape: bf16[128,128], index: 5, kind: input, shape index: {}]   ;;  %s2533_s6 = inlined_call_operand.hbm [shape: f32[1,128], index: 6, kind: input, shape index: {}]   ;;  %s2534_s7 = inlined_call_operand.hbm [shape: bf16[128,768], index: 7, kind: input, shape index: {}]   ;;  %s2535_s8 = inlined_call_operand.vmem [shape: f32[1,768], index: 8, kind: input, shape index: {}]   ;;  %s2536_s9 = inlined_call_operand.hbm [shape: f32[16,256], index: 9, kind: output, shape index: {}]  }
   0x1   :  { %15 = vsyncpa [#allocation6], 0 }
   0x2   :  { %16 = vsyncpa [#allocation9], 0 }
   0x3   :  { %17 = vsyncpa [#allocation12], 0  ;;  %s36_s11 = sshll.u32 %s2528_s1, 4  ;;  %s37_s11 = int_to_ptr.hbm [resolvable:$true] %s36_s11 }
   0x4   :  { %18 = vsyncpa [#allocation4], 0  ;;  %s2255_s12 = smov [#allocation5]   ;;  %s60_s16 = sshll.u32 %s2530_s3, 4  ;;  %s61_s16 = int_to_ptr.hbm [resolvable:$true] %s60_s16 }
   0x5   :  { %s38_s13 = sshll.u32 %s2255_s12, 4  ;;  %s2256_s17 = smov 192   ;;  %s39_s13 = int_to_ptr.vmem [resolvable:$true] %s38_s13 }
   0x6   :  { %s2257_s18 = smov 12   ;;  %s2258_s19 = smov [#allocation8]  }
   0x7   :  { %44 = dma.hbm_to_vmem [thread:$0]  %s37_s11, 6144, %s39_s13, [#allocation6], %s2256_s17, %s2256_s17, %s2257_s18  }
   0x8   :  { %s62_s20 = sshll.u32 %s2258_s19, 4  ;;  %s2259_s21 = smov 64   ;;  %s63_s20 = int_to_ptr.vmem [resolvable:$true] %s62_s20 }
   0x9   :  { %s2260_s22 = smov 4   ;;  %s89_s24 = sshll.u32 %s2533_s6, 4  ;;  %s90_s24 = int_to_ptr.hbm [resolvable:$true] %s89_s24 }
   0xa   :  { %68 = dma.hbm_to_vmem [thread:$0]  %s61_s16, 1024, %s63_s20, [#allocation9], %s2259_s21, %s2259_s21, %s2260_s22  }
   0xb   :  { %s2261_s25 = smov [#allocation11]   ;;  %s23_s28 = sshll.u32 %s2527_s0, 4  ;;  %s24_s28 = int_to_ptr.hbm [resolvable:$true] %s23_s28 }
   0xc   :  { %s91_s3 = sshll.u32 %s2261_s25, 4  ;;  %s2262_s29 = smov [#allocation2]   ;;  %s92_s3 = int_to_ptr.vmem [resolvable:$true] %s91_s3 }
   0xd   :  { %94 = dma.hbm_to_vmem [thread:$0]  %s90_s24, 16, %s92_s3, [#allocation12]  }
   0xe   :  { %s25_s30 = sshll.u32 %s2262_s29, 4  ;;  %s2263_s10 = smov 256   ;;  %s26_s30 = int_to_ptr.vmem [resolvable:$true] %s25_s30 }
   0xf   :  { %s2264_s11 = smov 16   ;;  %s50_s13 = sshll.u32 %s2529_s2, 4  ;;  %s51_s13 = int_to_ptr.hbm [resolvable:$true] %s50_s13 }
  0x10   :  { %31 = dma.hbm_to_vmem [thread:$0]  %s24_s28, 512, %s26_s30, [#allocation3], %s2263_s10, %s2263_s10, %s2264_s11  }
  0x11   :  { %s2265_s14 = smov [#allocation7]   ;;  %s75_s17 = sshll.u32 %s2532_s5, 4  ;;  %s76_s17 = int_to_ptr.hbm [resolvable:$true] %s75_s17 }
  0x12   :  { %s52_s15 = sshll.u32 %s2265_s14, 4  ;;  %s2266_s18 = smov [#allocation10]   ;;  %s53_s15 = int_to_ptr.vmem [resolvable:$true] %s52_s15 }
  0x13   :  { %55 = dma.hbm_to_vmem [thread:$0]  %s51_s13, 48, %s53_s15, [#allocation6]  }
  0x14   :  { %s77_s19 = sshll.u32 %s2266_s18, 4  ;;  %s99_s23 = sshll.u32 %s2534_s7, 4  ;;  %s78_s19 = int_to_ptr.vmem [resolvable:$true] %s77_s19  ;;  %s100_s23 = int_to_ptr.hbm [resolvable:$true] %s99_s23 }
  0x15   :  { %83 = dma.hbm_to_vmem [thread:$0]  %s76_s17, 1024, %s78_s19, [#allocation9], %s2259_s21, %s2259_s21, %s2260_s22  }
  0x16   :  { %s2267_s2 = smov [#allocation13]   ;;  %s2268_s25 = smov 384  }
  0x17   :  { %s101_s24 = sshll.u32 %s2267_s2, 4  ;;  %s2269_s3 = smov 24   ;;  %s102_s24 = int_to_ptr.vmem [resolvable:$true] %s101_s24 }
  0x18   :  { %107 = dma.hbm_to_vmem [thread:$0]  %s100_s23, 6144, %s102_s24, [#allocation12], %s2268_s25, %s2268_s25, %s2269_s3  }
  0x19   :  { %2245 = dma.done.wait [#allocation3], 512  }
  0x1a   :  { %2246 = vsyncadd [#allocation3], 4294966784 }
  0x1b   :  { %2247 = dma.done.wait [#allocation6], 6192  }
  0x1c   :  { %2248 = vsyncadd [#allocation6], 4294961104 }
  0x1d   :  { %2249 = dma.done.wait [#allocation9], 2048  }
  0x1e   :  { %2250 = vsyncadd [#allocation9], 4294965248 }
  0x1f   :  { %2251 = dma.done.wait [#allocation12], 6160  }
  0x20   :  { %2252 = vsyncadd [#allocation12], 4294961136  ;;  %v1477_v0 = vld [vmem:[#allocation5 + $0xa8] sm:$0xf]  ;;  %v1873_v1 = vld [vmem:[#allocation5 + $0xb0] sm:$0xf0] }
  0x21   :  { %v1573_v2 = vld [vmem:[#allocation5 + $0x168] sm:$0xf]  ;;  %v1478_v3 = vor.u32 %v1873_v1, %v1477_v0  ;;  %v1897_v4 = vld [vmem:[#allocation5 + $0x170] sm:$0xf0]  ;;  %v1465_v5 = vld [vmem:[#allocation5 + $0x90] sm:$0xf] }
  0x22   :  { %v1870_v6 = vld [vmem:[#allocation5 + $0x98] sm:$0xf0]  ;;  %v1574_v7 = vor.u32 %v1897_v4, %v1573_v2  ;;  %v1561_v8 = vld [vmem:[#allocation5 + $0x150] sm:$0xf]  ;;  %v1453_v12 = vld [vmem:[#allocation5 + $0x78] sm:$0xf] }
  0x23   :  { %v1894_v9 = vld [vmem:[#allocation5 + $0x158] sm:$0xf0]  ;;  %472 = vmatpush.bf16.msra.mxu0 %v1478_v3  ;;  %v1466_v10 = vor.u32 %v1870_v6, %v1465_v5  ;;  %v1867_v13 = vld [vmem:[#allocation5 + $0x80] sm:$0xf0]  ;;  %v1549_v14 = vld [vmem:[#allocation5 + $0x138] sm:$0xf] }
  0x24   :  { %486 = vmatpush.bf16.msra.mxu1 %v1574_v7  ;;  %v1562_v11 = vor.u32 %v1894_v9, %v1561_v8  ;;  %v1891_v15 = vld [vmem:[#allocation5 + $0x140] sm:$0xf0]  ;;  %v1872_v16 = vld [vmem:[#allocation5 + $0xac] sm:$0xf]  ;;  %v1479_v17 = vld [vmem:[#allocation5 + $0xb4] sm:$0xf0]  ;;  %v1454_v19 = vor.u32 %v1867_v13, %v1453_v12 }
  0x25   :  { %v1482_v18 = vor.u32 %v1872_v16, %v1479_v17  ;;  %v1441_v20 = vld [vmem:[#allocation5 + $0x60] sm:$0xf]  ;;  %v1896_v21 = vld [vmem:[#allocation5 + $0x16c] sm:$0xf]  ;;  %v1575_v22 = vld [vmem:[#allocation5 + $0x174] sm:$0xf0]  ;;  %v1550_v23 = vor.u32 %v1891_v15, %v1549_v14 }
  0x26   :  { %v1864_v24 = vld [vmem:[#allocation5 + $0x68] sm:$0xf0]  ;;  %v1578_v25 = vor.u32 %v1896_v21, %v1575_v22  ;;  %v1869_v26 = vld [vmem:[#allocation5 + $0x94] sm:$0xf]  ;;  %v1467_v27 = vld [vmem:[#allocation5 + $0x9c] sm:$0xf0] }
  0x27   :  { %473 = vmatpush.bf16.msra.mxu0 %v1466_v10  ;;  %500 = vmatpush.bf16.msra.mxu2 %v1482_v18  ;;  %v1537_v28 = vld [vmem:[#allocation5 + $0x120] sm:$0xf]  ;;  %v1888_v29 = vld [vmem:[#allocation5 + $0x128] sm:$0xf0]  ;;  %v1470_v30 = vor.u32 %v1869_v26, %v1467_v27  ;;  %v1893_v31 = vld [vmem:[#allocation5 + $0x154] sm:$0xf]  ;;  %v1442_v34 = vor.u32 %v1864_v24, %v1441_v20 }
  0x28   :  { %487 = vmatpush.bf16.msra.mxu1 %v1562_v11  ;;  %514 = vmatpush.bf16.msra.mxu3 %v1578_v25  ;;  %v1563_v32 = vld [vmem:[#allocation5 + $0x15c] sm:$0xf0]  ;;  %v1866_v33 = vld [vmem:[#allocation5 + $0x7c] sm:$0xf]  ;;  %v1429_v35 = vld [vmem:[#allocation5 + $0x48] sm:$0xf]  ;;  %v1538_v39 = vor.u32 %v1888_v29, %v1537_v28 }
  0x29   :  { %v1861_v36 = vld [vmem:[#allocation5 + $0x50] sm:$0xf0]  ;;  %v1566_v37 = vor.u32 %v1893_v31, %v1563_v32  ;;  %v1455_v38 = vld [vmem:[#allocation5 + $0x84] sm:$0xf0]  ;;  %v1890_v43 = vld [vmem:[#allocation5 + $0x13c] sm:$0xf] }
  0x2a   :  { %v1525_v40 = vld [vmem:[#allocation5 + $0x108] sm:$0xf]  ;;  %v1885_v41 = vld [vmem:[#allocation5 + $0x110] sm:$0xf0]  ;;  %v1458_v42 = vor.u32 %v1866_v33, %v1455_v38  ;;  %v1863_v45 = vld [vmem:[#allocation5 + $0x64] sm:$0xf]  ;;  %v1430_v48 = vor.u32 %v1861_v36, %v1429_v35 }
  0x2b   :  { %474 = vmatpush.bf16.msra.mxu0 %v1454_v19  ;;  %501 = vmatpush.bf16.msra.mxu2 %v1470_v30  ;;  %v1551_v44 = vld [vmem:[#allocation5 + $0x144] sm:$0xf0]  ;;  %v1443_v46 = vld [vmem:[#allocation5 + $0x6c] sm:$0xf0]  ;;  %v1887_v49 = vld [vmem:[#allocation5 + $0x124] sm:$0xf]  ;;  %v1526_v51 = vor.u32 %v1885_v41, %v1525_v40 }
  0x2c   :  { %488 = vmatpush.bf16.msra.mxu1 %v1550_v23  ;;  %515 = vmatpush.bf16.msra.mxu3 %v1566_v37  ;;  %v1554_v47 = vor.u32 %v1890_v43, %v1551_v44  ;;  %v1539_v50 = vld [vmem:[#allocation5 + $0x12c] sm:$0xf0]  ;;  %v1858_v53 = vld [vmem:[#allocation5 + $0x38] sm:$0xf0]  ;;  %v1446_v54 = vor.u32 %v1863_v45, %v1443_v46  ;;  %v1860_v58 = vld [vmem:[#allocation5 + $0x4c] sm:$0xf] }
  0x2d   :  { %v1417_v52 = vld [vmem:[#allocation5 + $0x30] sm:$0xf]  ;;  %v1882_v56 = vld [vmem:[#allocation5 + $0xf8] sm:$0xf0]  ;;  %v1542_v57 = vor.u32 %v1887_v49, %v1539_v50  ;;  %v1431_v59 = vld [vmem:[#allocation5 + $0x54] sm:$0xf0] }
  0x2e   :  { %v1513_v55 = vld [vmem:[#allocation5 + $0xf0] sm:$0xf]  ;;  %v1418_v60 = vor.u32 %v1858_v53, %v1417_v52  ;;  %v1884_v61 = vld [vmem:[#allocation5 + $0x10c] sm:$0xf]  ;;  %v1527_v62 = vld [vmem:[#allocation5 + $0x114] sm:$0xf0]  ;;  %v1434_v3 = vor.u32 %v1860_v58, %v1431_v59 }
  0x2f   :  { %475 = vmatpush.bf16.msra.mxu0 %v1442_v34  ;;  %502 = vmatpush.bf16.msra.mxu2 %v1458_v42  ;;  %v1514_v63 = vor.u32 %v1882_v56, %v1513_v55  ;;  %v1405_v0 = vld [vmem:[#allocation5 + $0x18] sm:$0xf]  ;;  %v1855_v1 = vld [vmem:[#allocation5 + $0x20] sm:$0xf0]  ;;  %v1857_v5 = vld [vmem:[#allocation5 + $0x34] sm:$0xf]  ;;  %v1530_v8 = vor.u32 %v1884_v61, %v1527_v62 }
  0x30   :  { %489 = vmatpush.bf16.msra.mxu1 %v1538_v39  ;;  %516 = vmatpush.bf16.msra.mxu3 %v1554_v47  ;;  %v1501_v2 = vld [vmem:[#allocation5 + $0xd8] sm:$0xf]  ;;  %v1879_v4 = vld [vmem:[#allocation5 + $0xe0] sm:$0xf0]  ;;  %v1419_v6 = vld [vmem:[#allocation5 + $0x3c] sm:$0xf0]  ;;  %v1406_v9 = vor.u32 %v1855_v1, %v1405_v0 }
  0x31   :  { %v1393_v7 = vld [vmem:[#allocation5] sm:$0xf]  ;;  %v1852_v10 = vld [vmem:[#allocation5 + $0x8] sm:$0xf0]  ;;  %v1881_v11 = vld [vmem:[#allocation5 + $0xf4] sm:$0xf]  ;;  %v1502_v13 = vor.u32 %v1879_v4, %v1501_v2  ;;  %v1422_v17 = vor.u32 %v1857_v5, %v1419_v6 }
  0x32   :  { %v1515_v12 = vld [vmem:[#allocation5 + $0xfc] sm:$0xf0]  ;;  %v1876_v15 = vld [vmem:[#allocation5 + $0xc8] sm:$0xf0]  ;;  %v1485_v16 = vld [vmem:[#allocation5 + $0xb0] sm:$0xf]  ;;  %v1394_v25 = vor.u32 %v1852_v10, %v1393_v7 }
  0x33   :  { %476 = vmatpush.bf16.msra.mxu0 %v1430_v48  ;;  %503 = vmatpush.bf16.msra.mxu2 %v1446_v54  ;;  %v1489_v14 = vld [vmem:[#allocation5 + $0xc0] sm:$0xf]  ;;  %v1874_v18 = vld [vmem:[#allocation5 + $0xb8] sm:$0xf0]  ;;  %v1581_v19 = vld [vmem:[#allocation5 + $0x170] sm:$0xf]  ;;  %v1518_v22 = vor.u32 %v1881_v11, %v1515_v12 }
  0x34   :  { %490 = vmatpush.bf16.msra.mxu1 %v1526_v51  ;;  %517 = vmatpush.bf16.msra.mxu3 %v1542_v57  ;;  %v1898_v20 = vld [vmem:[#allocation5 + $0x178] sm:$0xf0]  ;;  %v138_v21 = vld [vmem:[#allocation2] sm:$0xff]  ;;  %v1407_v24 = vld [vmem:[#allocation5 + $0x24] sm:$0xf0]  ;;  %v1490_v29 = vor.u32 %v1876_v15, %v1489_v14  ;;  %v1486_v30 = vor.u32 %v1874_v18, %v1485_v16  ;;  %s1375_s28 = sshll.u32 %s2536_s9, 4  ;;  %s1376_s28 = int_to_ptr.hbm [resolvable:$true] %s1375_s28 }
  0x35   :  { %v1854_v23 = vld [vmem:[#allocation5 + $0x1c] sm:$0xf]  ;;  %v140_v26 = vld [vmem:[#allocation2 + $0x10] sm:$0xff]  ;;  %v1503_v28 = vld [vmem:[#allocation5 + $0xe4] sm:$0xf0]  ;;  %v1582_v33 = vor.u32 %v1898_v20, %v1581_v19 }
  0x36   :  { %v1878_v27 = vld [vmem:[#allocation5 + $0xdc] sm:$0xf]  ;;  %v139_v31 = vld [vmem:[#allocation2 + $0x8] sm:$0xff]  ;;  %v1473_v34 = vld [vmem:[#allocation5 + $0x98] sm:$0xf]  ;;  %v1410_v37 = vor.u32 %v1854_v23, %v1407_v24  ;;  %v2351_v38 = vpack.c.bf16 %v140_v26, %v138_v21 }
  0x37   :  { %477 = vmatpush.bf16.msra.mxu0 %v1418_v60  ;;  %504 = vmatpush.bf16.msra.mxu2 %v1434_v3  ;;  %v141_v32 = vld [vmem:[#allocation2 + $0x18] sm:$0xff]  ;;  %v1871_v35 = vld [vmem:[#allocation5 + $0xa0] sm:$0xf0]  ;;  %v1506_v40 = vor.u32 %v1878_v27, %v1503_v28  ;;  %v1395_v42 = vld [vmem:[#allocation5 + $0xc] sm:$0xf0] }
  0x38   :  { %491 = vmatpush.bf16.msra.mxu1 %v1514_v63  ;;  %518 = vmatpush.bf16.msra.mxu3 %v1530_v8  ;;  %v1569_v36 = vld [vmem:[#allocation5 + $0x158] sm:$0xf]  ;;  %v1895_v39 = vld [vmem:[#allocation5 + $0x160] sm:$0xf0]  ;;  %v2353_v43 = vpack.c.bf16 %v141_v32, %v139_v31  ;;  %v1491_v45 = vld [vmem:[#allocation5 + $0xcc] sm:$0xf0]  ;;  %v1474_v46 = vor.u32 %v1871_v35, %v1473_v34 }
  0x39   :  { %v1851_v41 = vld [vmem:[#allocation5 + $0x4] sm:$0xf]  ;;  %v1570_v47 = vor.u32 %v1895_v39, %v1569_v36  ;;  %v1461_v48 = vld [vmem:[#allocation5 + $0x80] sm:$0xf]  ;;  %v1868_v49 = vld [vmem:[#allocation5 + $0x88] sm:$0xf0] }
  0x3a   :  { %v1875_v44 = vld [vmem:[#allocation5 + $0xc4] sm:$0xf]  ;;  %v1398_v50 = vor.u32 %v1851_v41, %v1395_v42  ;;  %v1557_v51 = vld [vmem:[#allocation5 + $0x140] sm:$0xf]  ;;  %v1892_v52 = vld [vmem:[#allocation5 + $0x148] sm:$0xf0]  ;;  %v1462_v54 = vor.u32 %v1868_v49, %v1461_v48 }
  0x3b   :  { %478 = vmatpush.bf16.msra.mxu0 %v1406_v9  ;;  %505 = vmatpush.bf16.msra.mxu2 %v1422_v17  ;;  %v1494_v53 = vor.u32 %v1875_v44, %v1491_v45  ;;  %v1558_v55 = vor.u32 %v1892_v52, %v1557_v51  ;;  %v1449_v56 = vld [vmem:[#allocation5 + $0x68] sm:$0xf]  ;;  %v1865_v57 = vld [vmem:[#allocation5 + $0x70] sm:$0xf0]  ;;  %v1437_v62 = vld [vmem:[#allocation5 + $0x50] sm:$0xf] }
  0x3c   :  { %492 = vmatpush.bf16.msra.mxu1 %v1502_v13  ;;  %519 = vmatpush.bf16.msra.mxu3 %v1518_v22  ;;  %v1545_v58 = vld [vmem:[#allocation5 + $0x128] sm:$0xf]  ;;  %v1889_v59 = vld [vmem:[#allocation5 + $0x130] sm:$0xf0]  ;;  %v1450_v60 = vor.u32 %v1865_v57, %v1449_v56  ;;  %v1862_v63 = vld [vmem:[#allocation5 + $0x58] sm:$0xf0] }
  0x3d   :  { %v1546_v61 = vor.u32 %v1889_v59, %v1545_v58  ;;  %v1533_v0 = vld [vmem:[#allocation5 + $0x110] sm:$0xf]  ;;  %v1886_v1 = vld [vmem:[#allocation5 + $0x118] sm:$0xf0]  ;;  %v1438_v2 = vor.u32 %v1862_v63, %v1437_v62  ;;  %v1425_v4 = vld [vmem:[#allocation5 + $0x38] sm:$0xf] }
  0x3e   :  { %v1534_v3 = vor.u32 %v1886_v1, %v1533_v0  ;;  %v1859_v5 = vld [vmem:[#allocation5 + $0x40] sm:$0xf0]  ;;  %v1521_v6 = vld [vmem:[#allocation5 + $0xf8] sm:$0xf]  ;;  %v1413_v10 = vld [vmem:[#allocation5 + $0x20] sm:$0xf] }
  0x3f   :  { %479 = vmatpush.bf16.msra.mxu0 %v1394_v25  ;;  %506 = vmatpush.bf16.msra.mxu2 %v1410_v37  ;;  %v1883_v7 = vld [vmem:[#allocation5 + $0x100] sm:$0xf0]  ;;  %v1426_v8 = vor.u32 %v1859_v5, %v1425_v4  ;;  %v1856_v11 = vld [vmem:[#allocation5 + $0x28] sm:$0xf0]  ;;  %v1509_v12 = vld [vmem:[#allocation5 + $0xe0] sm:$0xf] }
  0x40   :  { %493 = vmatpush.bf16.msra.mxu1 %v1490_v29  ;;  %520 = vmatpush.bf16.msra.mxu3 %v1506_v40  ;;  %v1522_v9 = vor.u32 %v1883_v7, %v1521_v6  ;;  %v1880_v13 = vld [vmem:[#allocation5 + $0xe8] sm:$0xf0]  ;;  %v1414_v14 = vor.u32 %v1856_v11, %v1413_v10  ;;  %v1401_v16 = vld [vmem:[#allocation5 + $0x8] sm:$0xf]  ;;  %v1853_v17 = vld [vmem:[#allocation5 + $0x10] sm:$0xf0] }
  0x41   :  { %v1510_v15 = vor.u32 %v1880_v13, %v1509_v12  ;;  %v1497_v18 = vld [vmem:[#allocation5 + $0xc8] sm:$0xf]  ;;  %v1877_v19 = vld [vmem:[#allocation5 + $0xd0] sm:$0xf0]  ;;  %v1402_v20 = vor.u32 %v1853_v17, %v1401_v16  ;;  %v208_v22 = vld [vmem:[#allocation7] sm:$0x7] }
  0x42   :  { %480 = vmatmul.bf16.vlgmr.msra.gmra.mxu0 %v2351_v38  ;;  %v1498_v21 = vor.u32 %v1877_v19, %v1497_v18  ;;  %v210_v23 = vperm.slane %v208_v22, 0  ;;  %v1906_v32 = vld [vmem:[#allocation8 + $0x38] sm:$0xff]  ;;  %v1905_v35 = vld [vmem:[#allocation8 + $0x30] sm:$0xff]  ;;  %v1904_v36 = vld [vmem:[#allocation8 + $0x28] sm:$0xff]  ;;  %v212_v42 = vperm.slane %v208_v22, 2  ;;  %v211_v58 = vperm.slane %v208_v22, 1 }
  0x43   :  { %528 = vmatpush.bf16.msrb.mxu0 %v1486_v30  ;;  %494 = vmatmul.bf16.vlgmr.msra.gmra.mxu1 %v2353_v43  ;;  %v1903_v39 = vld [vmem:[#allocation8 + $0x20] sm:$0xff]  ;;  %v1901_v48 = vld [vmem:[#allocation8 + $0x10] sm:$0xff]  ;;  %v1914_v6 = vld [vmem:[#allocation10 + $0x38] sm:$0xff] }
  0x44   :  { %542 = vmatpush.bf16.msrb.mxu1 %v1582_v33  ;;  %507 = vmatpush.bf16.msra.mxu2 %v1398_v50  ;;  %v1900_v50 = vld [vmem:[#allocation8 + $0x8] sm:$0xff]  ;;  %v1899_v56 = vld [vmem:[#allocation8] sm:$0xff]  ;;  %v1913_v10 = vld [vmem:[#allocation10 + $0x30] sm:$0xff] }
  0x45   :  { %521 = vmatpush.bf16.msra.mxu3 %v1494_v53  ;;  %v1912_v17 = vld [vmem:[#allocation10 + $0x28] sm:$0xff] }
  0x47   :  { %529 = vmatpush.bf16.msrb.mxu0 %v1474_v46  ;;  %508 = vmatmul.bf16.vlgmr.msra.gmra.mxu2 %v2351_v38 }
  0x48   :  { %543 = vmatpush.bf16.msrb.mxu1 %v1570_v47  ;;  %522 = vmatmul.bf16.vlgmr.msra.gmra.mxu3 %v2353_v43 }
  0x49   :  { %709 = vmatpush.bf16.msrb.mxu2 %v1906_v32  ;;  %794 = vmatpush.bf16.msrb.mxu3 %v1914_v6  ;;  %v1954_v6 = vld [vmem:[#allocation13 + $0x134] sm:$0xf0] }
  0x4b   :  { %530 = vmatpush.bf16.msrb.mxu0 %v1462_v54 }
  0x4c   :  { %544 = vmatpush.bf16.msrb.mxu1 %v1558_v55 }
  0x4d   :  { %710 = vmatpush.bf16.msrb.mxu2 %v1905_v35  ;;  %795 = vmatpush.bf16.msrb.mxu3 %v1913_v10 }
  0x4f   :  { %531 = vmatpush.bf16.msrb.mxu0 %v1450_v60 }
  0x50   :  { %545 = vmatpush.bf16.msrb.mxu1 %v1546_v61 }
  0x51   :  { %711 = vmatpush.bf16.msrb.mxu2 %v1904_v36  ;;  %796 = vmatpush.bf16.msrb.mxu3 %v1912_v17  ;;  %v1961_v17 = vld [vmem:[#allocation13 + $0x16c] sm:$0xf0] }
  0x53   :  { %532 = vmatpush.bf16.msrb.mxu0 %v1438_v2 }
  0x54   :  { %546 = vmatpush.bf16.msrb.mxu1 %v1534_v3 }
  0x55   :  { %712 = vmatpush.bf16.msrb.mxu2 %v1903_v39 }
  0x57   :  { %533 = vmatpush.bf16.msrb.mxu0 %v1426_v8 }
  0x58   :  { %547 = vmatpush.bf16.msrb.mxu1 %v1522_v9 }
  0x5b   :  { %534 = vmatpush.bf16.msrb.mxu0 %v1414_v14 }
  0x5c   :  { %548 = vmatpush.bf16.msrb.mxu1 %v1510_v15 }
  0x5f   :  { %535 = vmatpush.bf16.msrb.mxu0 %v1402_v20 }
  0x60   :  { %549 = vmatpush.bf16.msrb.mxu1 %v1498_v21 }
  0x62   :  { %536 = vmatmul.bf16.vlgmr.msrb.gmra.mxu0 %v2351_v38 }
  0x63   :  { %550 = vmatmul.bf16.vlgmr.msrb.gmra.mxu1 %v2353_v43  ;;  %v1902_v43 = vld [vmem:[#allocation8 + $0x18] sm:$0xff] }
  0x64   :  { %713 = vmatpush.bf16.msrb.mxu2 %v1902_v43 }
  0x68   :  { %714 = vmatpush.bf16.msrb.mxu2 %v1901_v48 }
  0x6c   :  { %715 = vmatpush.bf16.msrb.mxu2 %v1900_v50 }
  0x70   :  { %716 = vmatpush.bf16.msrb.mxu2 %v1899_v56 }
  0xbf   :  { %v481_v24 = vpop.f32.mrf.mxu0 }
  0xc0   :  { %v495_v25 = vpop.f32.mrf.mxu1  ;;  %v482_v26 = vadd.f32 %v481_v24, %v210_v23 }
  0xc2   :  { %v496_v27 = vadd.f32 %v495_v25, %v482_v26 }
  0xc4   :  { %v1583_v31 = vmul.f32 -1.442695, %v496_v27 }
  0xc6   :  { %1981 = vpow2.f32 %v1583_v31 }
  0xc7   :  { %v483_v28 = vpop.f32.mrf.mxu0 }
  0xc8   :  { %v484_v29 = vadd.f32 %v483_v28, %v210_v23  ;;  %v497_v30 = vpop.f32.mrf.mxu1  ;;  %v1911_v28 = vld [vmem:[#allocation10 + $0x20] sm:$0xff] }
  0xc9   :  { %797 = vmatpush.bf16.msrb.mxu3 %v1911_v28  ;;  %v1952_v28 = vld [vmem:[#allocation13 + $0x12c] sm:$0xf] }
  0xca   :  { %v498_v33 = vadd.f32 %v497_v30, %v484_v29  ;;  %v509_v44 = vpop.f32.mrf.mxu2 }
  0xcb   :  { %v523_v52 = vpop.f32.mrf.mxu3  ;;  %v510_v2 = vadd.f32 %v509_v44, %v211_v58 }
  0xcc   :  { %v1584_v34 = vmul.f32 -1.442695, %v498_v33  ;;  %v1982_v37 = vpop.eup %1981 }
  0xcd   :  { %v2361_v40 = vadd.f32 1.0, %v1982_v37  ;;  %v524_v11 = vadd.f32 %v523_v52, %v510_v2  ;;  %v1957_v2 = vld [vmem:[#allocation13 + $0x154] sm:$0xf] }
  0xce   :  { %1983 = vpow2.f32 %v1584_v34 }
  0xcf   :  { %1985 = vrcp.f32 %v2361_v40  ;;  %vm569_vm0 = vweird.f32 %v2361_v40  ;;  %v575_v14 = vand.u32 2147483648, %v2361_v40  ;;  %v573_v16 = vand.u32 2147483647, %v2361_v40 }
  0xd1   :  { %v576_v23 = vor.u32 1.1754944e-38, %v575_v14  ;;  %vm574_vm5 = vcmp.eq.f32.partialorder %v573_v16, 8.507059e+37  ;;  %v1945_v14 = vld [vmem:[#allocation13 + $0xf4] sm:$0xf]  ;;  %v1829_v16 = vld [vmem:[#allocation13 + $0x158] sm:$0xf] }
  0xd2   :  { %v511_v61 = vpop.f32.mrf.mxu2  ;;  %v1830_v18 = vor.u32 %v1961_v17, %v1829_v16  ;;  %v1733_v16 = vld [vmem:[#allocation13 + $0x98] sm:$0xf]  ;;  %v1937_v17 = vld [vmem:[#allocation13 + $0xac] sm:$0xf0] }
  0xd3   :  { %v512_v4 = vadd.f32 %v511_v61, %v211_v58  ;;  %v525_v8 = vpop.f32.mrf.mxu3  ;;  %v1909_v61 = vld [vmem:[#allocation10 + $0x10] sm:$0xff] }
  0xd4   :  { %v1984_v38 = vpop.eup %1983  ;;  %1141 = vmatpush.bf16.msra.mxu2 %v1830_v18  ;;  %v1934_v18 = vld [vmem:[#allocation13 + $0x9c] sm:$0xf] }
  0xd5   :  { %v2363_v41 = vadd.f32 1.0, %v1984_v38  ;;  %v2367_v51 = vpop.eup %1985  ;;  %v526_v13 = vadd.f32 %v525_v8, %v512_v4  ;;  %v1823_v4 = vld [vmem:[#allocation13 + $0x168] sm:$0xf0]  ;;  %v1951_v8 = vld [vmem:[#allocation13 + $0x124] sm:$0xf] }
  0xd6   :  { %v565_v55 = vmul.f32 %v2367_v51, %v2361_v40  ;;  %vm570_vm1 = vweird.f32 %v2367_v51 }
  0xd7   :  { %1987 = vrcp.f32 %v2363_v41  ;;  %vm2385_vm2 = vmor %vm569_vm0, %vm570_vm1  ;;  %v590_v21 = vand.u32 2147483648, %v2363_v41  ;;  %vm584_vm4 = vweird.f32 %v2363_v41  ;;  %v588_v24 = vand.u32 2147483647, %v2363_v41 }
  0xd8   :  { %v566_v63 = vsub.f32 1.0, %v565_v55 }
  0xd9   :  { %v591_v31 = vor.u32 1.1754944e-38, %v590_v21  ;;  %vm589_vm7 = vcmp.eq.f32.partialorder %v588_v24, 8.507059e+37 }
  0xda   :  { %v567_v9 = vmul.f32 %v2367_v51, %v566_v63  ;;  %v1907_v63 = vld [vmem:[#allocation10] sm:$0xff] }
  0xdc   :  { %v568_v15 = vadd.f32 %v2367_v51, %v567_v9  ;;  %v1799_v9 = vld [vmem:[#allocation13 + $0x138] sm:$0xf0] }
  0xdd   :  { %v2369_v53 = vpop.eup %1987 }
  0xde   :  { %v580_v57 = vmul.f32 %v2369_v53, %v2363_v41  ;;  %vm585_vm3 = vweird.f32 %v2369_v53  ;;  %v572_v26 = vsel %vm2385_vm2, %v2367_v51, %v568_v15  ;;  %v1775_v15 = vld [vmem:[#allocation13 + $0x108] sm:$0xf0] }
  0xdf   :  { %v537_v45 = vpop.f32.mrf.mxu0  ;;  %vm586_vm6 = vmor %vm584_vm4, %vm585_vm3  ;;  %v577_v33 = vsel %vm574_vm5, %v576_v23, %v572_v26  ;;  %v1942_v23 = vld [vmem:[#allocation13 + $0xd4] sm:$0xf0]  ;;  %v1805_v26 = vld [vmem:[#allocation13 + $0x128] sm:$0xf] }
  0xe0   :  { %v538_v46 = vadd.f32 %v537_v45, %v212_v42  ;;  %v551_v47 = vpop.f32.mrf.mxu1  ;;  %v581_v1 = vsub.f32 1.0, %v580_v57 }
  0xe2   :  { %v552_v49 = vadd.f32 %v551_v47, %v538_v46  ;;  %v582_v12 = vmul.f32 %v2369_v53, %v581_v1  ;;  %v1960_v1 = vld [vmem:[#allocation13 + $0x164] sm:$0xf0] }
  0xe4   :  { %v1585_v54 = vmul.f32 -1.442695, %v552_v49  ;;  %v583_v19 = vadd.f32 %v2369_v53, %v582_v12  ;;  %v1773_v12 = vld [vmem:[#allocation13 + $0xf0] sm:$0xf] }
  0xe6   :  { %1989 = vpow2.f32 %v1585_v54  ;;  %v587_v29 = vsel %vm586_vm6, %v2369_v53, %v583_v19  ;;  %v1958_v19 = vld [vmem:[#allocation13 + $0x15c] sm:$0xf] }
  0xe7   :  { %v539_v59 = vpop.f32.mrf.mxu0  ;;  %v592_v35 = vsel %vm589_vm7, %v591_v31, %v587_v29  ;;  %v1939_v29 = vld [vmem:[#allocation13 + $0xc4] sm:$0xf] }
  0xe8   :  { %v540_v60 = vadd.f32 %v539_v59, %v212_v42  ;;  %v553_v62 = vpop.f32.mrf.mxu1 }
  0xea   :  { %v554_v0 = vadd.f32 %v553_v62, %v540_v60  ;;  %v1910_v60 = vld [vmem:[#allocation10 + $0x18] sm:$0xff]  ;;  %v1908_v62 = vld [vmem:[#allocation10 + $0x8] sm:$0xff] }
  0xeb   :  { %798 = vmatpush.bf16.msrb.mxu3 %v1910_v60  ;;  %v1979_v60 = vld [vmem:[%s2531_s4] ss:$0 sm:$0xff] }
  0xec   :  { %v1990_v3 = vpop.eup %1989  ;;  %v1586_v5 = vmul.f32 -1.442695, %v554_v0  ;;  %v1821_v0 = vld [vmem:[#allocation13 + $0x150] sm:$0xf] }
  0xed   :  { %v2375_v7 = vadd.f32 1.0, %v1990_v3  ;;  %v1822_v3 = vor.u32 %v1960_v1, %v1821_v0  ;;  %v1921_v0 = vld [vmem:[#allocation13 + $0x34] sm:$0xf]  ;;  %v1679_v1 = vld [vmem:[#allocation13 + $0x48] sm:$0xf0] }
  0xee   :  { %1991 = vpow2.f32 %v1586_v5  ;;  %v1797_v5 = vld [vmem:[#allocation13 + $0x120] sm:$0xf] }
  0xef   :  { %1993 = vrcp.f32 %v2375_v7  ;;  %v615_v42 = vand.u32 2147483648, %v2375_v7  ;;  %vm609_vm9 = vweird.f32 %v2375_v7  ;;  %v613_v44 = vand.u32 2147483647, %v2375_v7  ;;  %799 = vmatpush.bf16.msrb.mxu3 %v1909_v61  ;;  %1113 = vmatpush.bf16.msra.mxu0 %v1822_v3 }
  0xf0   :  { %1995 = vtanh.f32 %v524_v11  ;;  %v1798_v10 = vor.u32 %v1954_v6, %v1797_v5  ;;  %v1802_v11 = vor.u32 %v1951_v8, %v1799_v9  ;;  %v1653_v5 = vld [vmem:[#allocation13] sm:$0xf]  ;;  %v1918_v6 = vld [vmem:[#allocation13 + $0x14] sm:$0xf0]  ;;  %v1915_v8 = vld [vmem:[#allocation13 + $0x4] sm:$0xf] }
  0xf1   :  { %1997 = vtanh.f32 %v526_v13  ;;  %v616_v49 = vor.u32 1.1754944e-38, %v615_v42  ;;  %vm614_vm12 = vcmp.eq.f32.partialorder %v613_v44, 8.507059e+37  ;;  %v1948_v13 = vld [vmem:[#allocation13 + $0x104] sm:$0xf0]  ;;  %v1933_v42 = vld [vmem:[#allocation13 + $0x94] sm:$0xf] }
  0xf2   :  { %v1774_v21 = vor.u32 %v1948_v13, %v1773_v12  ;;  %v1727_v44 = vld [vmem:[#allocation13 + $0xa8] sm:$0xf0]  ;;  %v1655_v9 = vld [vmem:[#allocation13 + $0x18] sm:$0xf0] }
  0xf3   :  { %800 = vmatpush.bf16.msrb.mxu3 %v1908_v62  ;;  %1114 = vmatpush.bf16.msra.mxu0 %v1798_v10  ;;  %v1677_v62 = vld [vmem:[#allocation13 + $0x30] sm:$0xf] }
  0xf4   :  { %v1992_v20 = vpop.eup %1991 }
  0xf5   :  { %v1994_v22 = vpop.eup %1993  ;;  %v603_v25 = vadd.f32 1.0, %v1992_v20  ;;  %v1831_v20 = vld [vmem:[#allocation13 + $0x170] sm:$0xf0] }
  0xf6   :  { %v605_v27 = vmul.f32 %v1994_v22, %v2375_v7  ;;  %v1996_v32 = vpop.eup %1995  ;;  %vm610_vm8 = vweird.f32 %v1994_v22  ;;  %v1826_v7 = vor.u32 %v1957_v2, %v1823_v4  ;;  %v1834_v24 = vor.u32 %v1958_v19, %v1831_v20  ;;  %v1735_v20 = vld [vmem:[#allocation13 + $0xb0] sm:$0xf0] }
  0xf7   :  { %1999 = vrcp.f32 %v603_v25  ;;  %v1998_v34 = vpop.eup %1997  ;;  %v634_v37 = vmul.f32 %v1996_v32, %v577_v33  ;;  %vm611_vm10 = vmor %vm609_vm9, %vm610_vm8  ;;  %v630_v45 = vand.u32 2147483648, %v603_v25  ;;  %v628_v48 = vand.u32 2147483647, %v603_v25  ;;  %801 = vmatpush.bf16.msrb.mxu3 %v1907_v63  ;;  %v1807_v32 = vld [vmem:[#allocation13 + $0x140] sm:$0xf0]  ;;  %1115 = vmatpush.bf16.msra.mxu0 %v1774_v21 }
  0xf8   :  { %v606_v30 = vsub.f32 1.0, %v605_v27  ;;  %v635_v39 = vmul.f32 %v1998_v34, %v592_v35  ;;  %vm624_vm13 = vweird.f32 %v603_v25  ;;  %1127 = vmatpush.bf16.msra.mxu1 %v1826_v7  ;;  %v1955_v27 = vld [vmem:[#allocation13 + $0x13c] sm:$0xf0]  ;;  %v1810_v33 = vor.u32 %v1952_v28, %v1807_v32  ;;  %v1781_v34 = vld [vmem:[#allocation13 + $0xf8] sm:$0xf] }
  0xf9   :  { %2001 = vtanh.f32 %v634_v37  ;;  %v631_v52 = vor.u32 1.1754944e-38, %v630_v45  ;;  %vm629_vm15 = vcmp.eq.f32.partialorder %v628_v48, 8.507059e+37  ;;  %v1806_v31 = vor.u32 %v1955_v27, %v1805_v26  ;;  %v1946_v37 = vld [vmem:[#allocation13 + $0xfc] sm:$0xf]  ;;  %v1940_v48 = vld [vmem:[#allocation13 + $0xcc] sm:$0xf] }
  0xfa   :  { %v607_v36 = vmul.f32 %v1994_v22, %v606_v30  ;;  %2003 = vtanh.f32 %v635_v39  ;;  %v1751_v30 = vld [vmem:[#allocation13 + $0xd8] sm:$0xf0]  ;;  %v1924_v63 = vld [vmem:[#allocation13 + $0x44] sm:$0xf0]  ;;  %v1682_v4 = vor.u32 %v1921_v0, %v1679_v1  ;;  %v1734_v19 = vor.u32 %v1937_v17, %v1733_v16  ;;  %v1837_v21 = vld [vmem:[#allocation13 + $0x160] sm:$0xf] }
  0xfb   :  { %1155 = vmatpush.bf16.msra.mxu3 %v1834_v24  ;;  %v1754_v39 = vor.u32 %v1939_v29, %v1751_v30  ;;  %1142 = vmatpush.bf16.msra.mxu2 %v1806_v31  ;;  %v1678_v2 = vor.u32 %v1924_v63, %v1677_v62  ;;  %v1839_v26 = vld [vmem:[#allocation13 + $0x178] sm:$0xf0]  ;;  %v1709_v28 = vld [vmem:[#allocation13 + $0x68] sm:$0xf]  ;;  %v1931_v29 = vld [vmem:[#allocation13 + $0x7c] sm:$0xf0] }
  0xfc   :  { %v608_v41 = vadd.f32 %v1994_v22, %v607_v36  ;;  %1128 = vmatpush.bf16.msra.mxu1 %v1802_v11  ;;  %v1949_v36 = vld [vmem:[#allocation13 + $0x10c] sm:$0xf0]  ;;  %v1654_v11 = vor.u32 %v1918_v6, %v1653_v5  ;;  %v1928_v30 = vld [vmem:[#allocation13 + $0x6c] sm:$0xf]  ;;  %v1710_v31 = vor.u32 %v1931_v29, %v1709_v28  ;;  %v1711_v32 = vld [vmem:[#allocation13 + $0x80] sm:$0xf0] }
  0xfd   :  { %v2000_v38 = vpop.eup %1999  ;;  %v1767_v62 = vld [vmem:[#allocation13 + $0xe8] sm:$0xf0]  ;;  %v1741_v0 = vld [vmem:[#allocation13 + $0xa0] sm:$0xf]  ;;  %v1938_v1 = vld [vmem:[#allocation13 + $0xb4] sm:$0xf0] }
  0xfe   :  { %v620_v40 = vmul.f32 %v2000_v38, %v603_v25  ;;  %v612_v46 = vsel %vm611_vm10, %v1994_v22, %v608_v41  ;;  %vm625_vm11 = vweird.f32 %v2000_v38  ;;  %v1749_v22 = vld [vmem:[#allocation13 + $0xc0] sm:$0xf]  ;;  %v1778_v25 = vor.u32 %v1945_v14, %v1775_v15  ;;  %v1936_v41 = vld [vmem:[#allocation13 + $0xa4] sm:$0xf0]  ;;  %v1717_v6 = vld [vmem:[#allocation13 + $0x70] sm:$0xf] }
  0xff   :  { %v617_v51 = vsel %vm614_vm12, %v616_v49, %v612_v46  ;;  %vm626_vm14 = vmor %vm624_vm13, %vm625_vm11  ;;  %v2002_v53 = vpop.eup %2001  ;;  %v1750_v35 = vor.u32 %v1942_v23, %v1749_v22  ;;  %1156 = vmatpush.bf16.msra.mxu3 %v1810_v33  ;;  %v1757_v46 = vld [vmem:[#allocation13 + $0xc8] sm:$0xf]  ;;  %v1759_v49 = vld [vmem:[#allocation13 + $0xe0] sm:$0xf0]  ;;  %v1658_v14 = vor.u32 %v1915_v8, %v1655_v9  ;;  %v1738_v23 = vor.u32 %v1934_v18, %v1735_v20 }
 0x100   :  { %v621_v43 = vsub.f32 1.0, %v620_v40  ;;  %v2004_v55 = vpop.eup %2003  ;;  %v638_v57 = vmul.f32 %v2002_v53, %v617_v51  ;;  %1129 = vmatpush.bf16.msra.mxu1 %v1778_v25  ;;  %v1725_v40 = vld [vmem:[#allocation13 + $0x90] sm:$0xf]  ;;  %v1730_v51 = vor.u32 %v1933_v42, %v1727_v44  ;;  %v1930_v53 = vld [vmem:[#allocation13 + $0x74] sm:$0xf0] }
 0x101   :  { %1116 = vmatpush.bf16.msra.mxu0 %v1750_v35  ;;  %v1962_v22 = vld [vmem:[#allocation13 + $0x174] sm:$0xf0]  ;;  %v1959_v25 = vld [vmem:[#allocation13 + $0x164] sm:$0xf]  ;;  %v1813_v33 = vld [vmem:[#allocation13 + $0x130] sm:$0xf]  ;;  %v1714_v35 = vor.u32 %v1928_v30, %v1711_v32 }
 0x102   :  { %v622_v47 = vmul.f32 %v2000_v38, %v621_v43  ;;  %v1782_v43 = vor.u32 %v1949_v36, %v1781_v34  ;;  %v1838_v24 = vor.u32 %v1962_v22, %v1837_v21  ;;  %v1842_v27 = vor.u32 %v1959_v25, %v1839_v26  ;;  %v1956_v34 = vld [vmem:[#allocation13 + $0x144] sm:$0xf0]  ;;  %v1922_v42 = vld [vmem:[#allocation13 + $0x3c] sm:$0xf]  ;;  %v1687_v44 = vld [vmem:[#allocation13 + $0x50] sm:$0xf0] }
 0x103   :  { %v1814_v36 = vor.u32 %v1956_v34, %v1813_v33  ;;  %v1929_v8 = vld [vmem:[#allocation13 + $0x74] sm:$0xf]  ;;  %v1719_v9 = vld [vmem:[#allocation13 + $0x88] sm:$0xf0]  ;;  %v1669_v18 = vld [vmem:[#allocation13 + $0x10] sm:$0xf] }
 0x104   :  { %v623_v50 = vadd.f32 %v2000_v38, %v622_v47  ;;  %v1943_v47 = vld [vmem:[#allocation13 + $0xdc] sm:$0xf0]  ;;  %1130 = vmatpush.bf16.msra.mxu1 %v1754_v39  ;;  %1143 = vmatpush.bf16.msra.mxu2 %v1782_v43  ;;  %v1917_v20 = vld [vmem:[#allocation13 + $0x14] sm:$0xf]  ;;  %v1671_v21 = vld [vmem:[#allocation13 + $0x28] sm:$0xf0] }
 0x105   :  { %v1980_v25 = vld [vmem:[#allocation11] ss:$0 sm:$0xff] }
 0x106   :  { %v627_v54 = vsel %vm626_vm14, %v2000_v38, %v623_v50  ;;  %v1783_v38 = vld [vmem:[#allocation13 + $0x110] sm:$0xf0]  ;;  %v1726_v50 = vor.u32 %v1936_v41, %v1725_v40  ;;  %v1685_v40 = vld [vmem:[#allocation13 + $0x38] sm:$0xf]  ;;  %v1925_v41 = vld [vmem:[#allocation13 + $0x4c] sm:$0xf0] }
 0x107   :  { %v632_v56 = vsel %vm629_vm15, %v631_v52, %v627_v54  ;;  %v1786_v45 = vor.u32 %v1946_v37, %v1783_v38  ;;  %v1701_v52 = vld [vmem:[#allocation13 + $0x60] sm:$0xf]  ;;  %v1758_v54 = vor.u32 %v1943_v47, %v1757_v46  ;;  %v1953_v37 = vld [vmem:[#allocation13 + $0x134] sm:$0xf]  ;;  %v1815_v38 = vld [vmem:[#allocation13 + $0x148] sm:$0xf0]  ;;  %v1686_v43 = vor.u32 %v1925_v41, %v1685_v40 }
 0x108   :  { %v639_v58 = vmul.f32 %v2004_v55, %v632_v56  ;;  %v1927_v56 = vld [vmem:[#allocation13 + $0x64] sm:$0xf]  ;;  %1117 = vmatpush.bf16.msra.mxu0 %v1726_v50  ;;  %1131 = vmatpush.bf16.msra.mxu1 %v1730_v51  ;;  %v1818_v39 = vor.u32 %v1953_v37, %v1815_v38  ;;  %v1950_v46 = vld [vmem:[#allocation13 + $0x114] sm:$0xf0]  ;;  %v1690_v47 = vor.u32 %v1922_v42, %v1687_v44  ;;  %v1791_v50 = vld [vmem:[#allocation13 + $0x118] sm:$0xf0] }
 0x109   :  { %1157 = vmatpush.bf16.msra.mxu3 %v1786_v45  ;;  %1144 = vmatpush.bf16.msra.mxu2 %v1758_v54  ;;  %v1789_v45 = vld [vmem:[#allocation13 + $0x100] sm:$0xf]  ;;  %v1916_v54 = vld [vmem:[#allocation13 + $0xc] sm:$0xf]  ;;  %v2408_v32 = vld [vmem:[%s2535_s8] sm:$0x3f] }
 0x10a   :  { %v640_v59 = vpack.c.bf16 %v639_v58, %v638_v57  ;;  %v1703_v57 = vld [vmem:[#allocation13 + $0x78] sm:$0xf0]  ;;  %v1762_v58 = vor.u32 %v1940_v48, %v1759_v49  ;;  %v1790_v48 = vor.u32 %v1950_v46, %v1789_v45  ;;  %v1947_v49 = vld [vmem:[#allocation13 + $0x104] sm:$0xf]  ;;  %v861_v33 = vperm.slane %v2408_v32, 0  ;;  %s2270_s8 = smov [#allocation14]  }
 0x10b   :  { %v1706_v61 = vor.u32 %v1927_v56, %v1703_v57  ;;  %v1794_v51 = vor.u32 %v1947_v49, %v1791_v50  ;;  %v1663_v56 = vld [vmem:[#allocation13 + $0x20] sm:$0xf0]  ;;  %v1765_v57 = vld [vmem:[#allocation13 + $0xd0] sm:$0xf]  ;;  %v862_v34 = vperm.slane %v2408_v32, 1  ;;  %s1373_s22 = sshll.u32 %s2270_s8, 4  ;;  %s1374_s22 = int_to_ptr.vmem [resolvable:$true] %s1373_s22 }
 0x10c   :  { %717 = vmatmul.bf16.vlgmr.msrb.gmra.mxu2 %v640_v59  ;;  %v1702_v59 = vor.u32 %v1930_v53, %v1701_v52  ;;  %v1661_v52 = vld [vmem:[#allocation13 + $0x8] sm:$0xf]  ;;  %v1919_v53 = vld [vmem:[#allocation13 + $0x1c] sm:$0xf0] }
 0x10d   :  { %1158 = vmatpush.bf16.msra.mxu3 %v1762_v58  ;;  %1132 = vmatpush.bf16.msra.mxu1 %v1706_v61  ;;  %v1944_v58 = vld [vmem:[#allocation13 + $0xe4] sm:$0xf0]  ;;  %v1941_v61 = vld [vmem:[#allocation13 + $0xd4] sm:$0xf] }
 0x10e   :  { %1118 = vmatpush.bf16.msra.mxu0 %v1702_v59  ;;  %1145 = vmatpush.bf16.msra.mxu2 %v1734_v19  ;;  %v1666_v59 = vor.u32 %v1916_v54, %v1663_v56  ;;  %v1770_v63 = vor.u32 %v1941_v61, %v1767_v62  ;;  %v1920_v19 = vld [vmem:[#allocation13 + $0x24] sm:$0xf0] }
 0x10f   :  { %v1670_v22 = vor.u32 %v1920_v19, %v1669_v18 }
 0x111   :  { %1133 = vmatpush.bf16.msra.mxu1 %v1682_v4  ;;  %1159 = vmatpush.bf16.msra.mxu3 %v1738_v23  ;;  %v1743_v4 = vld [vmem:[#allocation13 + $0xb8] sm:$0xf0]  ;;  %v1674_v23 = vor.u32 %v1917_v20, %v1671_v21 }
 0x112   :  { %1119 = vmatpush.bf16.msra.mxu0 %v1678_v2  ;;  %1146 = vmatpush.bf16.msra.mxu2 %v1710_v31  ;;  %v1935_v2 = vld [vmem:[#allocation13 + $0xa4] sm:$0xf] }
 0x113   :  { %v1746_v5 = vor.u32 %v1935_v2, %v1743_v4 }
 0x115   :  { %1134 = vmatpush.bf16.msra.mxu1 %v1658_v14  ;;  %1160 = vmatpush.bf16.msra.mxu3 %v1714_v35  ;;  %v1923_v14 = vld [vmem:[#allocation13 + $0x44] sm:$0xf] }
 0x116   :  { %1120 = vmatpush.bf16.msra.mxu0 %v1654_v11  ;;  %1147 = vmatpush.bf16.msra.mxu2 %v1686_v43  ;;  %v1722_v11 = vor.u32 %v1929_v8, %v1719_v9 }
 0x119   :  { %1183 = vmatpush.bf16.msrb.mxu1 %v1842_v27  ;;  %1161 = vmatpush.bf16.msra.mxu3 %v1690_v47 }
 0x11a   :  { %1169 = vmatpush.bf16.msrb.mxu0 %v1838_v24 }
 0x11d   :  { %1184 = vmatpush.bf16.msrb.mxu1 %v1818_v39  ;;  %1162 = vmatpush.bf16.msra.mxu3 %v1666_v59 }
 0x11e   :  { %1170 = vmatpush.bf16.msrb.mxu0 %v1814_v36 }
 0x121   :  { %1185 = vmatpush.bf16.msrb.mxu1 %v1794_v51  ;;  %v865_v51 = vperm.slane %v2408_v32, 4 }
 0x122   :  { %1171 = vmatpush.bf16.msrb.mxu0 %v1790_v48 }
 0x125   :  { %1186 = vmatpush.bf16.msrb.mxu1 %v1770_v63 }
 0x129   :  { %1187 = vmatpush.bf16.msrb.mxu1 %v1746_v5 }
 0x12d   :  { %1188 = vmatpush.bf16.msrb.mxu1 %v1722_v11 }
 0x18f   :  { %v718_v55 = vpop.f32.mrf.mxu2 }
 0x190   :  { %v719_v3 = vadd.f32 %v1979_v60, %v718_v55  ;;  %v1662_v55 = vor.u32 %v1919_v53, %v1661_v52  ;;  %v866_v52 = vperm.slane %v2408_v32, 5 }
 0x192   :  { %v723_v12 = vmax.f32 %v719_v3, 0.0  ;;  %1148 = vmatpush.bf16.msra.mxu2 %v1662_v55  ;;  %v1742_v3 = vor.u32 %v1938_v1, %v1741_v0 }
 0x197   :  { %v720_v7 = vpop.f32.mrf.mxu2 }
 0x198   :  { %v721_v10 = vadd.f32 %v1979_v60, %v720_v7  ;;  %v1766_v60 = vor.u32 %v1944_v58, %v1765_v57  ;;  %v1932_v7 = vld [vmem:[#allocation13 + $0x84] sm:$0xf0]  ;;  %v863_v58 = vperm.slane %v2408_v32, 2 }
 0x19a   :  { %v724_v13 = vmax.f32 %v721_v10, 0.0  ;;  %1172 = vmatpush.bf16.msrb.mxu0 %v1766_v60  ;;  %v1718_v10 = vor.u32 %v1932_v7, %v1717_v6  ;;  %v864_v6 = vperm.slane %v2408_v32, 3 }
 0x19c   :  { %v725_v15 = vpack.c.bf16 %v724_v13, %v723_v12  ;;  %v1693_v12 = vld [vmem:[#allocation13 + $0x40] sm:$0xf]  ;;  %v1926_v13 = vld [vmem:[#allocation13 + $0x54] sm:$0xf0] }
 0x19d   :  { %v1694_v16 = vor.u32 %v1926_v13, %v1693_v12 }
 0x19e   :  { %802 = vmatmul.bf16.vlgmr.msrb.gmra.mxu3 %v725_v15  ;;  %1173 = vmatpush.bf16.msrb.mxu0 %v1742_v3  ;;  %v1695_v15 = vld [vmem:[#allocation13 + $0x58] sm:$0xf0] }
 0x19f   :  { %v1698_v17 = vor.u32 %v1923_v14, %v1695_v15 }
 0x1a1   :  { %1189 = vmatpush.bf16.msrb.mxu1 %v1698_v17 }
 0x1a2   :  { %1174 = vmatpush.bf16.msrb.mxu0 %v1718_v10 }
 0x1a5   :  { %1190 = vmatpush.bf16.msrb.mxu1 %v1674_v23 }
 0x1a6   :  { %1175 = vmatpush.bf16.msrb.mxu0 %v1694_v16 }
 0x1aa   :  { %1176 = vmatpush.bf16.msrb.mxu0 %v1670_v22 }
 0x221   :  { %v803_v24 = vpop.f32.mrf.mxu3 }
 0x222   :  { %v804_v26 = vadd.f32 %v1980_v25, %v803_v24 }
 0x224   :  { %v808_v29 = vmax.f32 %v804_v26, 0.0 }
 0x229   :  { %v805_v27 = vpop.f32.mrf.mxu3 }
 0x22a   :  { %v806_v28 = vadd.f32 %v1980_v25, %v805_v27 }
 0x22c   :  { %v809_v30 = vmax.f32 %v806_v28, 0.0 }
 0x22e   :  { %v810_v31 = vpack.c.bf16 %v809_v30, %v808_v29 }
 0x230   :  { %1121 = vmatmul.bf16.vlgmr.msra.gmra.mxu0 %v810_v31  ;;  %1135 = vmatmul.bf16.vlgmr.msra.gmra.mxu1 %v810_v31 }
 0x231   :  { %1149 = vmatmul.bf16.vlgmr.msra.gmra.mxu2 %v810_v31  ;;  %1163 = vmatmul.bf16.vlgmr.msra.gmra.mxu3 %v810_v31 }
 0x240   :  { %1177 = vmatmul.bf16.vlgmr.msrb.gmra.mxu0 %v810_v31  ;;  %1191 = vmatmul.bf16.vlgmr.msrb.gmra.mxu1 %v810_v31 }
 0x2ad   :  { %v1122_v35 = vpop.f32.mrf.mxu0  ;;  %v1136_v36 = vpop.f32.mrf.mxu1 }
 0x2ae   :  { %v1123_v37 = vadd.f32 %v1122_v35, %v861_v33  ;;  %v1137_v38 = vadd.f32 %v1136_v36, %v862_v34 }
 0x2b0   :  { %v1843_v39 = vmul.f32 -1.442695, %v1123_v37  ;;  %v1844_v40 = vmul.f32 -1.442695, %v1137_v38 }
 0x2b2   :  { %2005 = vpow2.f32 %v1843_v39 }
 0x2b3   :  { %2007 = vpow2.f32 %v1844_v40 }
 0x2b4   :  { %v1150_v61 = vpop.f32.mrf.mxu2  ;;  %v1164_v7 = vpop.f32.mrf.mxu3 }
 0x2b5   :  { %v1124_v41 = vpop.f32.mrf.mxu0  ;;  %v1138_v42 = vpop.f32.mrf.mxu1  ;;  %v1151_v5 = vadd.f32 %v1150_v61, %v863_v58  ;;  %v1165_v14 = vadd.f32 %v1164_v7, %v864_v6 }
 0x2b6   :  { %v1125_v43 = vadd.f32 %v1124_v41, %v861_v33  ;;  %v1139_v44 = vadd.f32 %v1138_v42, %v862_v34 }
 0x2b8   :  { %v2006_v45 = vpop.eup %2005  ;;  %v1845_v46 = vmul.f32 -1.442695, %v1125_v43  ;;  %v1846_v49 = vmul.f32 -1.442695, %v1139_v44 }
 0x2b9   :  { %v2008_v47 = vpop.eup %2007  ;;  %v2412_v48 = vadd.f32 1.0, %v2006_v45 }
 0x2ba   :  { %v2414_v50 = vadd.f32 1.0, %v2008_v47  ;;  %2009 = vpow2.f32 %v1845_v46 }
 0x2bb   :  { %2011 = vrcp.f32 %v2412_v48  ;;  %vm1218_vm1 = vweird.f32 %v2412_v48  ;;  %v1222_v20 = vand.u32 2147483647, %v2412_v48  ;;  %v1224_v21 = vand.u32 2147483648, %v2412_v48 }
 0x2bc   :  { %2013 = vrcp.f32 %v2414_v50  ;;  %v1152_v25 = vpop.f32.mrf.mxu2  ;;  %vm1233_vm4 = vweird.f32 %v2414_v50  ;;  %v1239_v29 = vand.u32 2147483648, %v2414_v50  ;;  %v1237_v31 = vand.u32 2147483647, %v2414_v50  ;;  %v1166_v39 = vpop.f32.mrf.mxu3 }
 0x2bd   :  { %2015 = vpow2.f32 %v1846_v49  ;;  %v1178_v53 = vpop.f32.mrf.mxu0  ;;  %v1192_v54 = vpop.f32.mrf.mxu1  ;;  %v1225_v35 = vor.u32 1.1754944e-38, %v1224_v21  ;;  %v1153_v38 = vadd.f32 %v1152_v25, %v863_v58  ;;  %vm1223_vm6 = vcmp.eq.f32.partialorder %v1222_v20, 8.507059e+37 }
 0x2be   :  { %v1179_v55 = vadd.f32 %v1178_v53, %v865_v51  ;;  %v1193_v56 = vadd.f32 %v1192_v54, %v866_v52  ;;  %v1240_v44 = vor.u32 1.1754944e-38, %v1239_v29  ;;  %vm1238_vm7 = vcmp.eq.f32.partialorder %v1237_v31, 8.507059e+37 }
 0x2c0   :  { %v2010_v57 = vpop.eup %2009  ;;  %v1847_v59 = vmul.f32 -1.442695, %v1179_v55  ;;  %v1848_v63 = vmul.f32 -1.442695, %v1193_v56 }
 0x2c1   :  { %v2012_v60 = vpop.eup %2011  ;;  %v2421_v62 = vadd.f32 1.0, %v2010_v57 }
 0x2c2   :  { %v2423_v0 = vpop.eup %2013  ;;  %v1214_v1 = vmul.f32 %v2012_v60, %v2412_v48  ;;  %2017 = vpow2.f32 %v1847_v59  ;;  %vm1219_vm0 = vweird.f32 %v2012_v60  ;;  %v1167_v48 = vadd.f32 %v1166_v39, %v864_v6 }
 0x2c3   :  { %v2016_v2 = vpop.eup %2015  ;;  %v1229_v3 = vmul.f32 %v2423_v0, %v2414_v50  ;;  %2019 = vrcp.f32 %v2421_v62  ;;  %vm1234_vm2 = vweird.f32 %v2423_v0  ;;  %vm2448_vm3 = vmor %vm1218_vm1, %vm1219_vm0  ;;  %v1254_v45 = vand.u32 2147483648, %v2421_v62 }
 0x2c4   :  { %v1215_v4 = vsub.f32 1.0, %v1214_v1  ;;  %v2430_v8 = vadd.f32 1.0, %v2016_v2  ;;  %2021 = vpow2.f32 %v1848_v63  ;;  %vm2461_vm5 = vmor %vm1233_vm4, %vm1234_vm2  ;;  %vm1248_vm8 = vweird.f32 %v2421_v62 }
 0x2c5   :  { %v1230_v9 = vsub.f32 1.0, %v1229_v3  ;;  %v1180_v11 = vpop.f32.mrf.mxu0  ;;  %v1194_v15 = vpop.f32.mrf.mxu1  ;;  %v1252_v54 = vand.u32 2147483647, %v2421_v62  ;;  %v1255_v55 = vor.u32 1.1754944e-38, %v1254_v45 }
 0x2c6   :  { %v1216_v10 = vmul.f32 %v2012_v60, %v1215_v4  ;;  %2023 = vrcp.f32 %v2430_v8  ;;  %v1181_v19 = vadd.f32 %v1180_v11, %v865_v51  ;;  %v1195_v26 = vadd.f32 %v1194_v15, %v866_v52 }
 0x2c7   :  { %v1231_v12 = vmul.f32 %v2423_v0, %v1230_v9  ;;  %2025 = vtanh.f32 %v1151_v5  ;;  %vm1263_vm9 = vweird.f32 %v2430_v8  ;;  %v1269_v1 = vand.u32 2147483648, %v2430_v8 }
 0x2c8   :  { %v2018_v13 = vpop.eup %2017  ;;  %v1217_v17 = vadd.f32 %v2012_v60, %v1216_v10  ;;  %v1849_v33 = vmul.f32 -1.442695, %v1181_v19  ;;  %v1850_v42 = vmul.f32 -1.442695, %v1195_v26  ;;  %vm1253_vm2 = vcmp.eq.f32.partialorder %v1252_v54, 8.507059e+37 }
 0x2c9   :  { %v2434_v16 = vpop.eup %2019  ;;  %v2436_v18 = vadd.f32 1.0, %v2018_v13  ;;  %v1232_v24 = vadd.f32 %v2423_v0, %v1231_v12  ;;  %v1270_v26 = vor.u32 1.1754944e-38, %v1269_v1 }
 0x2ca   :  { %v1244_v22 = vmul.f32 %v2434_v16, %v2421_v62  ;;  %v2022_v23 = vpop.eup %2021  ;;  %v1221_v30 = vsel %vm2448_vm3, %v2012_v60, %v1217_v17  ;;  %v1267_v60 = vand.u32 2147483647, %v2430_v8  ;;  %vm1249_vm10 = vweird.f32 %v2434_v16 }
 0x2cb   :  { %2027 = vrcp.f32 %v2436_v18  ;;  %v2465_v40 = vadd.f32 1.0, %v2022_v23  ;;  %v1236_v41 = vsel %vm2461_vm5, %v2423_v0, %v1232_v24  ;;  %v1226_v43 = vsel %vm1223_vm6, %v1225_v35, %v1221_v30  ;;  %vm2495_vm15 = vmor %vm1248_vm8, %vm1249_vm10 }
 0x2cc   :  { %v2446_v27 = vpop.eup %2023  ;;  %2029 = vtanh.f32 %v1165_v14  ;;  %v1245_v37 = vsub.f32 1.0, %v1244_v22  ;;  %v1241_v50 = vsel %vm1238_vm7, %v1240_v44, %v1236_v41  ;;  %v1302_v57 = vand.u32 2147483647, %v2436_v18 }
 0x2cd   :  { %v1259_v32 = vmul.f32 %v2446_v27, %v2430_v8  ;;  %v2026_v34 = vpop.eup %2025  ;;  %2031 = vrcp.f32 %v2465_v40  ;;  %v1304_v61 = vand.u32 2147483648, %v2436_v18  ;;  %vm1298_vm11 = vweird.f32 %v2436_v18 }
 0x2ce   :  { %2033 = vpow2.f32 %v1849_v33  ;;  %v1246_v51 = vmul.f32 %v2434_v16, %v1245_v37  ;;  %v1353_v53 = vmul.f32 %v2026_v34, %v1226_v43  ;;  %vm1264_vm13 = vweird.f32 %v2446_v27 }
 0x2cf   :  { %v1260_v47 = vsub.f32 1.0, %v1259_v32  ;;  %2035 = vtanh.f32 %v1153_v38  ;;  %vm2487_vm14 = vcmp.eq.f32.partialorder %v1302_v57, 8.507059e+37  ;;  %v1305_v13 = vor.u32 1.1754944e-38, %v1304_v61  ;;  %vm2511_vm3 = vmor %vm1263_vm9, %vm1264_vm13 }
 0x2d0   :  { %2037 = vpow2.f32 %v1850_v42  ;;  %v1247_v0 = vadd.f32 %v2434_v16, %v1246_v51  ;;  %v1317_v17 = vand.u32 2147483647, %v2465_v40  ;;  %v1319_v19 = vand.u32 2147483648, %v2465_v40 }
 0x2d1   :  { %v2028_v46 = vpop.eup %2027  ;;  %v1261_v59 = vmul.f32 %v2446_v27, %v1260_v47  ;;  %2039 = vtanh.f32 %v1353_v53  ;;  %vm1313_vm4 = vweird.f32 %v2465_v40  ;;  %vm1268_vm6 = vcmp.eq.f32.partialorder %v1267_v60, 8.507059e+37 }
 0x2d2   :  { %v2030_v49 = vpop.eup %2029  ;;  %v1294_v52 = vmul.f32 %v2028_v46, %v2436_v18  ;;  %vm1299_vm12 = vweird.f32 %v2028_v46  ;;  %v1251_v15 = vsel %vm2495_vm15, %v2434_v16, %v1247_v0  ;;  %v1320_v8 = vor.u32 1.1754944e-38, %v1319_v19 }
 0x2d3   :  { %v1354_v58 = vmul.f32 %v2030_v49, %v1241_v50  ;;  %v2032_v63 = vpop.eup %2031  ;;  %v1262_v12 = vadd.f32 %v2446_v27, %v1261_v59  ;;  %vm1300_vm0 = vmor %vm1298_vm11, %vm1299_vm12  ;;  %v1256_v23 = vsel %vm1253_vm2, %v1255_v55, %v1251_v15  ;;  %vm1318_vm7 = vcmp.eq.f32.partialorder %v1317_v17, 8.507059e+37 }
 0x2d4   :  { %v1295_v56 = vsub.f32 1.0, %v1294_v52  ;;  %v2034_v3 = vpop.eup %2033  ;;  %v1309_v4 = vmul.f32 %v2032_v63, %v2465_v40  ;;  %vm1314_vm1 = vweird.f32 %v2032_v63 }
 0x2d5   :  { %v2036_v5 = vpop.eup %2035  ;;  %v1291_v9 = vadd.f32 1.0, %v2034_v3  ;;  %2041 = vtanh.f32 %v1354_v58  ;;  %v1266_v24 = vsel %vm2511_vm3, %v2446_v27, %v1262_v12  ;;  %vm1315_vm5 = vmor %vm1313_vm4, %vm1314_vm1 }
 0x2d6   :  { %v1296_v2 = vmul.f32 %v2028_v46, %v1295_v56  ;;  %v2038_v10 = vpop.eup %2037  ;;  %v1310_v14 = vsub.f32 1.0, %v1309_v4  ;;  %v1355_v32 = vmul.f32 %v2036_v5, %v1256_v23  ;;  %v1271_v33 = vsel %vm1268_vm6, %v1270_v26, %v1266_v24 }
 0x2d7   :  { %2043 = vrcp.f32 %v1291_v9  ;;  %v1292_v20 = vadd.f32 1.0, %v2038_v10  ;;  %v2040_v18 = vpop.eup %2039  ;;  %v1334_v40 = vand.u32 2147483648, %v1291_v9  ;;  %v1332_v43 = vand.u32 2147483647, %v1291_v9 }
 0x2d8   :  { %v1297_v6 = vadd.f32 %v2028_v46, %v1296_v2  ;;  %v1311_v62 = vmul.f32 %v2032_v63, %v1310_v14  ;;  %2045 = vtanh.f32 %v1167_v48  ;;  %vm1328_vm9 = vweird.f32 %v1291_v9 }
 0x2d9   :  { %2047 = vrcp.f32 %v1292_v20  ;;  %v1335_v47 = vor.u32 1.1754944e-38, %v1334_v40  ;;  %v1347_v49 = vand.u32 2147483647, %v1292_v20  ;;  %vm1333_vm12 = vcmp.eq.f32.partialorder %v1332_v43, 8.507059e+37 }
 0x2da   :  { %v1301_v21 = vsel %vm1300_vm0, %v2028_v46, %v1297_v6  ;;  %v1312_v25 = vadd.f32 %v2032_v63, %v1311_v62  ;;  %2049 = vtanh.f32 %v1355_v32  ;;  %v1349_v46 = vand.u32 2147483648, %v1292_v20 }
 0x2db   :  { %v1306_v16 = vsel %vm2487_vm14, %v1305_v13, %v1301_v21  ;;  %v2042_v29 = vpop.eup %2041  ;;  %vm1343_vm13 = vweird.f32 %v1292_v20  ;;  %vm1348_vm15 = vcmp.eq.f32.partialorder %v1347_v49, 8.507059e+37 }
 0x2dc   :  { %v1361_v28 = vmul.f32 %v2040_v18, %v1306_v16  ;;  %v1316_v30 = vsel %vm1315_vm5, %v2032_v63, %v1312_v25  ;;  %v1350_v54 = vor.u32 1.1754944e-38, %v1349_v46 }
 0x2dd   :  { %v2044_v31 = vpop.eup %2043  ;;  %v1321_v34 = vsel %vm1318_vm7, %v1320_v8, %v1316_v30 }
 0x2de   :  { %1365 = vst [vmem:[#allocation14] sm:$0xff] %v1361_v28  ;;  %v1324_v35 = vmul.f32 %v2044_v31, %v1291_v9  ;;  %v1362_v36 = vmul.f32 %v2042_v29, %v1321_v34  ;;  %v2046_v37 = vpop.eup %2045  ;;  %vm1329_vm8 = vweird.f32 %v2044_v31 }
 0x2df   :  { %v2048_v38 = vpop.eup %2047  ;;  %v1356_v27 = vmul.f32 %v2046_v37, %v1271_v33  ;;  %vm1330_vm10 = vmor %vm1328_vm9, %vm1329_vm8 }
 0x2e0   :  { %v1325_v39 = vsub.f32 1.0, %v1324_v35  ;;  %1366 = vst [vmem:[#allocation14 + $0x8] sm:$0xff] %v1362_v36  ;;  %v1339_v41 = vmul.f32 %v2048_v38, %v1292_v20  ;;  %vm1344_vm11 = vweird.f32 %v2048_v38  ;;  %v2050_v51 = vpop.eup %2049 }
 0x2e1   :  { %2051 = vtanh.f32 %v1356_v27  ;;  %vm1345_vm14 = vmor %vm1343_vm13, %vm1344_vm11 }
 0x2e2   :  { %v1326_v42 = vmul.f32 %v2044_v31, %v1325_v39  ;;  %v1340_v44 = vsub.f32 1.0, %v1339_v41 }
 0x2e4   :  { %v1327_v45 = vadd.f32 %v2044_v31, %v1326_v42  ;;  %v1341_v48 = vmul.f32 %v2048_v38, %v1340_v44 }
 0x2e6   :  { %v1331_v50 = vsel %vm1330_vm10, %v2044_v31, %v1327_v45  ;;  %v1342_v52 = vadd.f32 %v2048_v38, %v1341_v48 }
 0x2e7   :  { %v1336_v53 = vsel %vm1333_vm12, %v1335_v47, %v1331_v50  ;;  %v2052_v57 = vpop.eup %2051 }
 0x2e8   :  { %v1363_v55 = vmul.f32 %v2050_v51, %v1336_v53  ;;  %v1346_v56 = vsel %vm1345_vm14, %v2048_v38, %v1342_v52 }
 0x2e9   :  { %v1351_v58 = vsel %vm1348_vm15, %v1350_v54, %v1346_v56 }
 0x2ea   :  { %1367 = vst [vmem:[#allocation14 + $0x10] sm:$0xff] %v1363_v55  ;;  %v1364_v59 = vmul.f32 %v2052_v57, %v1351_v58 }
 0x2ec   :  { %1368 = vst [vmem:[#allocation14 + $0x18] sm:$0xff] %v1364_v59 }
 0x2ed   :  { %1381 = dma.vmem_to_hbm [thread:$0]  %s1374_s22, 512, %s1376_s28, [#allocation4], %s2263_s10, %s2263_s10, %s2264_s11  }
 0x2ee   :  { %2253 = dma.done.wait [#allocation4], 512  }
 0x2ef   :  { %2254 = vsyncadd [#allocation4], 4294966784 }
 0x2f0   :  { %1386 = vsyncpa [#allocation3], 1 }
 0x2f1   :  { %1387 = vsyncpa [#allocation6], 1 }
 0x2f2   :  { %1388 = vsyncpa [#allocation9], 1 }
 0x2f3   :  { %1389 = vsyncpa [#allocation12], 1 }
 0x2f4   :  { %1390 = vsyncpa [#allocation4], 1 }

</bundles_post_ra>
